<compile_context>
chip_gen: v7x
topology: tpu7x:2x2x1
jax: 0.10.0
libtpu: 0.0.40
codegen_flags: <defaults>
</compile_context>

<pallas_src>
import jax
import jax.numpy as jnp
from jax.experimental import pallas as pl
from jax.experimental.pallas import tpu as pltpu


def _lstm_kernel(x_ref, wih_ref, whh_ref, b_ref, wfc_ref, bfc_ref,
                 out_ref, xw_ref, h_ref, c_ref):
    # x_ref  : (Tc, Bb, E) bf16  time-major chunk of embedded inputs
    # wih_ref: (E, 4H)     bf16  (= W_ih^T, PyTorch gate order i, f, g, o)
    # whh_ref: (H, 4H)     bf16  (= W_hh^T)
    # b_ref  : (1, 4H)     f32   (= b_ih + b_hh)
    # wfc_ref: (1, H)      f32   (fc weight row, output_dim == 1)
    # bfc_ref: (1, 1)      f32
    # out_ref: (Bb, 1)     f32   (written only on the last time chunk)
    # xw_ref : (Tc*Bb, 4H) bf16  per-chunk hoisted input projection
    # h_ref  : (Bb, H)     f32   recurrent hidden state (carried across chunks)
    # c_ref  : (Bb, H)     f32   recurrent cell state   (carried across chunks)
    Tc, Bb, _E = x_ref.shape
    H = whh_ref.shape[0]
    t_chunk = pl.program_id(1)

    @pl.when(t_chunk == 0)
    def _():
        h_ref[...] = jnp.zeros_like(h_ref)
        c_ref[...] = jnp.zeros_like(c_ref)

    # Hoisted per-chunk input projection (off the serial path; the MXU is
    # otherwise mostly idle during the M=Bb recurrence).  Static Python loop
    # over the chunk avoids any (Tc, Bb, E) -> (Tc*Bb, E) relayout in Mosaic.
    bias = b_ref[...]
    for s in range(Tc):
        xw_ref[pl.ds(s * Bb, Bb), :] = (
            jnp.dot(x_ref[s], wih_ref[...], preferred_element_type=jnp.float32)
            + bias
        ).astype(jnp.bfloat16)

    def _sigmoid(x):
        # One EUP tanh instead of exp + divide -> shorter serial per-step chain.
        return 0.5 * (1.0 + jnp.tanh(0.5 * x))

    def step(s, carry):
        h, c = carry
        row0 = pl.multiple_of(s * Bb, Bb)
        gates = xw_ref[pl.ds(row0, Bb), :].astype(jnp.float32) + jnp.dot(
            h.astype(jnp.bfloat16), whh_ref[...],
            preferred_element_type=jnp.float32)            # (Bb, 4H) f32
        i_g = _sigmoid(gates[:, 0 * H:1 * H])
        f_g = _sigmoid(gates[:, 1 * H:2 * H])
        g_g = jnp.tanh(gates[:, 2 * H:3 * H])
        o_g = _sigmoid(gates[:, 3 * H:4 * H])
        c_new = f_g * c + i_g * g_g
        h_new = o_g * jnp.tanh(c_new)
        return h_new, c_new

    # Unroll is bounded to the chunk length (<= 4); the grid handles the rest.
    h_fin, c_fin = jax.lax.fori_loop(0, Tc, step, (h_ref[...], c_ref[...]),
                                     unroll=True)
    h_ref[...] = h_fin
    c_ref[...] = c_fin

    # Classifier head: tanh(fc(h_T)); output_dim == 1 -> VPU lane reduction.
    @pl.when(t_chunk == pl.num_programs(1) - 1)
    def _():
        logits = jnp.sum(h_fin * wfc_ref[...], axis=-1, keepdims=True) + bfc_ref[...]
        out_ref[...] = jnp.tanh(logits)


def _pick_time_chunk(T, max_chunk=4):
    for tc in range(min(max_chunk, T), 0, -1):
        if T % tc == 0:
            return tc
    return 1


def review_lstm_forward(input_ids, attention_mask, params, *,
                        time_chunk=4, batch_block=16):
    # attention_mask is accepted for API parity with the PyTorch module but,
    # exactly as in the reference forward(), it is not used.
    del attention_mask
    emb_table = params["embedding"]          # (V, E)
    w_ih = params["w_ih"]                    # (4H, E)
    w_hh = params["w_hh"]                    # (4H, H)
    b_ih = params["b_ih"]                    # (4H,)
    b_hh = params["b_hh"]                    # (4H,)
    w_fc = params["w_fc"]                    # (1, H)
    b_fc = params["b_fc"]                    # (1,)

    B, T = input_ids.shape
    E = emb_table.shape[1]
    H = w_hh.shape[1]

    Tc = _pick_time_chunk(T, time_chunk)
    Bb = max(16, (batch_block // 16) * 16)   # bf16 packs 16 sublanes per vreg
    Bp = ((B + Bb - 1) // Bb) * Bb
    n_bblk, n_tchk = Bp // Bb, T // Tc

    # Glue (kept in XLA): embedding gather time-major, pad batch, cast to bf16.
    x_tbe = jnp.take(emb_table, input_ids.T, axis=0)           # (T, B, E)
    x_tbe = jnp.pad(x_tbe, ((0, 0), (0, Bp - B), (0, 0)))      # (T, Bp, E)
    x_tbe = x_tbe.astype(jnp.bfloat16)

    wih_t = jnp.transpose(w_ih).astype(jnp.bfloat16)           # (E, 4H)
    whh_t = jnp.transpose(w_hh).astype(jnp.bfloat16)           # (H, 4H)
    bias = (b_ih + b_hh).reshape(1, 4 * H).astype(jnp.float32)
    wfc_row = w_fc.reshape(1, H).astype(jnp.float32)
    bfc = b_fc.reshape(1, 1).astype(jnp.float32)

    grid_spec = pltpu.PrefetchScalarGridSpec(
        num_scalar_prefetch=0,
        grid=(n_bblk, n_tchk),                                  # (batch, time)
        in_specs=[
            # x chunk: streamed + double-buffered by the pipeline.
            pl.BlockSpec((Tc, Bb, E), lambda b, t: (t, b, 0)),
            # Weights/bias: grid-invariant blocks (stay resident in VMEM).
            pl.BlockSpec((E, 4 * H), lambda b, t: (0, 0)),
            pl.BlockSpec((H, 4 * H), lambda b, t: (0, 0)),
            pl.BlockSpec((1, 4 * H), lambda b, t: (0, 0)),
            pl.BlockSpec((1, H), lambda b, t: (0, 0)),
            pl.BlockSpec((1, 1), lambda b, t: (0, 0)),
        ],
        out_specs=pl.BlockSpec((Bb, 1), lambda b, t: (b, 0)),
        scratch_shapes=[
            pltpu.VMEM((Tc * Bb, 4 * H), jnp.bfloat16),   # xw (per-chunk proj)
            pltpu.VMEM((Bb, H), jnp.float32),             # h carry
            pltpu.VMEM((Bb, H), jnp.float32),             # c carry
        ],
    )

    out_pad = pl.pallas_call(
        _lstm_kernel,
        out_shape=jax.ShapeDtypeStruct((Bp, 1), jnp.float32),
        grid_spec=grid_spec,
        compiler_params=pltpu.CompilerParams(
            # batch axis "parallel" -> megacore on v7x; time axis carries state.
            dimension_semantics=("parallel", "arbitrary"),
            vmem_limit_bytes=32 * 1024 * 1024,
        ),
    )(x_tbe, wih_t, whh_t, bias, wfc_row, bfc)

    return out_pad[:B]                                          # drop padded rows


def review_lstm_reference(input_ids, attention_mask, params):
    """Pure-JAX f32 reference matching the PyTorch forward()."""
    del attention_mask
    x = jnp.take(params["embedding"], input_ids, axis=0)        # (B, T, E)
    w_ih, w_hh = params["w_ih"], params["w_hh"]
    b = params["b_ih"] + params["b_hh"]
    H = w_hh.shape[1]
    B, T = input_ids.shape
    h = jnp.zeros((B, H), jnp.float32)
    c = jnp.zeros((B, H), jnp.float32)
    for t in range(T):
        gates = x[:, t, :] @ w_ih.T + h @ w_hh.T + b
        i = jax.nn.sigmoid(gates[:, 0 * H:1 * H])
        f = jax.nn.sigmoid(gates[:, 1 * H:2 * H])
        g = jnp.tanh(gates[:, 2 * H:3 * H])
        o = jax.nn.sigmoid(gates[:, 3 * H:4 * H])
        c = f * c + i * g
        h = o * jnp.tanh(c)
    return jnp.tanh(h @ params["w_fc"].T + params["b_fc"])


def init_params(key, vocab_size=512, embedding_dim=64, hidden_dim=128, output_dim=1):
    ks = jax.random.split(key, 7)
    s = 1.0 / jnp.sqrt(hidden_dim)
    return {
        "embedding": jax.random.normal(ks[0], (vocab_size, embedding_dim), jnp.float32),
        "w_ih": jax.random.uniform(ks[1], (4 * hidden_dim, embedding_dim), jnp.float32, -s, s),
        "w_hh": jax.random.uniform(ks[2], (4 * hidden_dim, hidden_dim), jnp.float32, -s, s),
        "b_ih": jax.random.uniform(ks[3], (4 * hidden_dim,), jnp.float32, -s, s),
        "b_hh": jax.random.uniform(ks[4], (4 * hidden_dim,), jnp.float32, -s, s),
        "w_fc": jax.random.uniform(ks[5], (output_dim, hidden_dim), jnp.float32, -s, s),
        "b_fc": jax.random.uniform(ks[6], (output_dim,), jnp.float32, -s, s),
    }


if __name__ == "__main__":
    key = jax.random.PRNGKey(0)
    k_param, k_ids = jax.random.split(key)

    B, T = 2, 8
    VOCAB, E, H, OUT = 512, 64, 128, 1

    params = init_params(k_param, vocab_size=VOCAB, embedding_dim=E,
                         hidden_dim=H, output_dim=OUT)

    input_ids = jax.random.randint(k_ids, (B, T), 0, VOCAB, dtype=jnp.int32)
    attention_mask = jnp.ones((B, T), dtype=jnp.int32)  # unused, as in reference

    out = review_lstm_forward(input_ids, attention_mask, params)
    out = jax.block_until_ready(out)
    assert out.shape == (B, OUT) and out.dtype == jnp.float32

    # Tolerance check vs. f32 reference (bf16 matmul operands -> loose atol).
    ref = jax.block_until_ready(review_lstm_reference(input_ids, attention_mask, params))
    max_err = float(jnp.max(jnp.abs(out - ref)))
    assert max_err < 5e-2, f"max abs err {max_err} vs reference"

    print("KERNEL_OK")
</pallas_src>

<mosaic_0001>
module attributes {stable_mosaic.version = 11 : i64} {
  func.func @_lstm_kernel(%arg0: i32, %arg1: i32, %arg2: memref<4x16x64xbf16, #tpu.memory_space<vmem>>, %arg3: memref<64x512xbf16, #tpu.memory_space<vmem>>, %arg4: memref<128x512xbf16, #tpu.memory_space<vmem>>, %arg5: memref<1x512xf32, #tpu.memory_space<vmem>>, %arg6: memref<1x128xf32, #tpu.memory_space<vmem>>, %arg7: memref<1x1xf32, #tpu.memory_space<vmem>>, %arg8: memref<16x1xf32, #tpu.memory_space<vmem>>, %arg9: memref<64x512xbf16, #tpu.memory_space<vmem>>, %arg10: memref<16x128xf32, #tpu.memory_space<vmem>>, %arg11: memref<16x128xf32, #tpu.memory_space<vmem>>) attributes {dimension_semantics = [#tpu.dimension_semantics<parallel>, #tpu.dimension_semantics<arbitrary>], iteration_bounds = array<i64: 1, 2>, scalar_prefetch = 0 : i64, scratch_operands = 3 : i64, tpu.core_type = #tpu.core_type<tc>, window_params = [{transform_indices = @transform_0, window_bounds = array<i64: 4, 16, 64>}, {pipeline_mode = #tpu.pipeline_mode<synchronous>, transform_indices = @transform_1, window_bounds = array<i64: 64, 512>}, {pipeline_mode = #tpu.pipeline_mode<synchronous>, transform_indices = @transform_2, window_bounds = array<i64: 128, 512>}, {pipeline_mode = #tpu.pipeline_mode<synchronous>, transform_indices = @transform_3, window_bounds = array<i64: 1, 512>}, {pipeline_mode = #tpu.pipeline_mode<synchronous>, transform_indices = @transform_4, window_bounds = array<i64: 1, 128>}, {pipeline_mode = #tpu.pipeline_mode<synchronous>, transform_indices = @transform_5, window_bounds = array<i64: 1, 1>}, {transform_indices = @transform_6, window_bounds = array<i64: 16, 1>}]} {
    %c0_i32 = arith.constant 0 : i32
    %0 = arith.cmpi eq, %arg1, %c0_i32 : i32
    %1 = arith.extui %0 : i1 to i32
    %c0_i32_0 = arith.constant 0 : i32
    %2 = arith.cmpi ne, %1, %c0_i32_0 : i32
    scf.if %2 {
      %cst_93 = arith.constant 0.000000e+00 : f32
      %203 = vector.broadcast %cst_93 : f32 to vector<16x128xf32>
      %c0_94 = arith.constant 0 : index
      %c0_95 = arith.constant 0 : index
      %204 = vector.load %arg10[%c0_94, %c0_95] : memref<16x128xf32, #tpu.memory_space<vmem>>, vector<16x128xf32>
      tpu.vector_store %arg10[%c0_94, %c0_95], %203 {strides = array<i32>} : memref<16x128xf32, #tpu.memory_space<vmem>>, vector<16x128xf32>,
      %cst_96 = arith.constant 0.000000e+00 : f32
      %205 = vector.broadcast %cst_96 : f32 to vector<16x128xf32>
      %c0_97 = arith.constant 0 : index
      %c0_98 = arith.constant 0 : index
      %206 = vector.load %arg11[%c0_97, %c0_98] : memref<16x128xf32, #tpu.memory_space<vmem>>, vector<16x128xf32>
      tpu.vector_store %arg11[%c0_97, %c0_98], %205 {strides = array<i32>} : memref<16x128xf32, #tpu.memory_space<vmem>>, vector<16x128xf32>,
    } else {
    }
    %c0 = arith.constant 0 : index
    %c0_1 = arith.constant 0 : index
    %3 = vector.load %arg5[%c0, %c0_1] : memref<1x512xf32, #tpu.memory_space<vmem>>, vector<1x512xf32>
    %c0_2 = arith.constant 0 : index
    %c0_3 = arith.constant 0 : index
    %c0_4 = arith.constant 0 : index
    %4 = vector.load %arg2[%c0_2, %c0_3, %c0_4] : memref<4x16x64xbf16, #tpu.memory_space<vmem>>, vector<1x16x64xbf16>
    %5 = vector.shape_cast %4 : vector<1x16x64xbf16> to vector<16x64xbf16>
    %c0_5 = arith.constant 0 : index
    %c0_6 = arith.constant 0 : index
    %6 = vector.load %arg3[%c0_5, %c0_6] : memref<64x512xbf16, #tpu.memory_space<vmem>>, vector<64x512xbf16>
    %cst = arith.constant dense<0.000000e+00> : vector<16x512xf32>
    %7 = tpu.matmul %5, %6, %cst {dimension_numbers = #tpu.dot_dimension_numbers<[1], [0], [0], [1], [0, 0, 1, 1], [], []>} : vector<16x64xbf16>, vector<64x512xbf16>, vector<16x512xf32> -> vector<16x512xf32>
    %8 = vector.broadcast %3 : vector<1x512xf32> to vector<16x512xf32>
    %9 = arith.addf %7, %8 : vector<16x512xf32>
    %10 = arith.truncf %9 : vector<16x512xf32> to vector<16x512xbf16>
    %c0_7 = arith.constant 0 : index
    %c0_8 = arith.constant 0 : index
    %11 = vector.load %arg9[%c0_7, %c0_8] : memref<64x512xbf16, #tpu.memory_space<vmem>>, vector<16x512xbf16>
    tpu.vector_store %arg9[%c0_7, %c0_8], %10 {strides = array<i32>} : memref<64x512xbf16, #tpu.memory_space<vmem>>, vector<16x512xbf16>,
    %c1 = arith.constant 1 : index
    %c0_9 = arith.constant 0 : index
    %c0_10 = arith.constant 0 : index
    %12 = vector.load %arg2[%c1, %c0_9, %c0_10] : memref<4x16x64xbf16, #tpu.memory_space<vmem>>, vector<1x16x64xbf16>
    %13 = vector.shape_cast %12 : vector<1x16x64xbf16> to vector<16x64xbf16>
    %c0_11 = arith.constant 0 : index
    %c0_12 = arith.constant 0 : index
    %14 = vector.load %arg3[%c0_11, %c0_12] : memref<64x512xbf16, #tpu.memory_space<vmem>>, vector<64x512xbf16>
    %cst_13 = arith.constant dense<0.000000e+00> : vector<16x512xf32>
    %15 = tpu.matmul %13, %14, %cst_13 {dimension_numbers = #tpu.dot_dimension_numbers<[1], [0], [0], [1], [0, 0, 1, 1], [], []>} : vector<16x64xbf16>, vector<64x512xbf16>, vector<16x512xf32> -> vector<16x512xf32>
    %16 = vector.broadcast %3 : vector<1x512xf32> to vector<16x512xf32>
    %17 = arith.addf %15, %16 : vector<16x512xf32>
    %18 = arith.truncf %17 : vector<16x512xf32> to vector<16x512xbf16>
    %c16 = arith.constant 16 : index
    %c0_14 = arith.constant 0 : index
    %19 = vector.load %arg9[%c16, %c0_14] : memref<64x512xbf16, #tpu.memory_space<vmem>>, vector<16x512xbf16>
    tpu.vector_store %arg9[%c16, %c0_14], %18 {strides = array<i32>} : memref<64x512xbf16, #tpu.memory_space<vmem>>, vector<16x512xbf16>,
    %c2 = arith.constant 2 : index
    %c0_15 = arith.constant 0 : index
    %c0_16 = arith.constant 0 : index
    %20 = vector.load %arg2[%c2, %c0_15, %c0_16] : memref<4x16x64xbf16, #tpu.memory_space<vmem>>, vector<1x16x64xbf16>
    %21 = vector.shape_cast %20 : vector<1x16x64xbf16> to vector<16x64xbf16>
    %c0_17 = arith.constant 0 : index
    %c0_18 = arith.constant 0 : index
    %22 = vector.load %arg3[%c0_17, %c0_18] : memref<64x512xbf16, #tpu.memory_space<vmem>>, vector<64x512xbf16>
    %cst_19 = arith.constant dense<0.000000e+00> : vector<16x512xf32>
    %23 = tpu.matmul %21, %22, %cst_19 {dimension_numbers = #tpu.dot_dimension_numbers<[1], [0], [0], [1], [0, 0, 1, 1], [], []>} : vector<16x64xbf16>, vector<64x512xbf16>, vector<16x512xf32> -> vector<16x512xf32>
    %24 = vector.broadcast %3 : vector<1x512xf32> to vector<16x512xf32>
    %25 = arith.addf %23, %24 : vector<16x512xf32>
    %26 = arith.truncf %25 : vector<16x512xf32> to vector<16x512xbf16>
    %c32 = arith.constant 32 : index
    %c0_20 = arith.constant 0 : index
    %27 = vector.load %arg9[%c32, %c0_20] : memref<64x512xbf16, #tpu.memory_space<vmem>>, vector<16x512xbf16>
    tpu.vector_store %arg9[%c32, %c0_20], %26 {strides = array<i32>} : memref<64x512xbf16, #tpu.memory_space<vmem>>, vector<16x512xbf16>,
    %c3 = arith.constant 3 : index
    %c0_21 = arith.constant 0 : index
    %c0_22 = arith.constant 0 : index
    %28 = vector.load %arg2[%c3, %c0_21, %c0_22] : memref<4x16x64xbf16, #tpu.memory_space<vmem>>, vector<1x16x64xbf16>
    %29 = vector.shape_cast %28 : vector<1x16x64xbf16> to vector<16x64xbf16>
    %c0_23 = arith.constant 0 : index
    %c0_24 = arith.constant 0 : index
    %30 = vector.load %arg3[%c0_23, %c0_24] : memref<64x512xbf16, #tpu.memory_space<vmem>>, vector<64x512xbf16>
    %cst_25 = arith.constant dense<0.000000e+00> : vector<16x512xf32>
    %31 = tpu.matmul %29, %30, %cst_25 {dimension_numbers = #tpu.dot_dimension_numbers<[1], [0], [0], [1], [0, 0, 1, 1], [], []>} : vector<16x64xbf16>, vector<64x512xbf16>, vector<16x512xf32> -> vector<16x512xf32>
    %32 = vector.broadcast %3 : vector<1x512xf32> to vector<16x512xf32>
    %33 = arith.addf %31, %32 : vector<16x512xf32>
    %34 = arith.truncf %33 : vector<16x512xf32> to vector<16x512xbf16>
    %c48 = arith.constant 48 : index
    %c0_26 = arith.constant 0 : index
    %35 = vector.load %arg9[%c48, %c0_26] : memref<64x512xbf16, #tpu.memory_space<vmem>>, vector<16x512xbf16>
    tpu.vector_store %arg9[%c48, %c0_26], %34 {strides = array<i32>} : memref<64x512xbf16, #tpu.memory_space<vmem>>, vector<16x512xbf16>,
    %c0_27 = arith.constant 0 : index
    %c0_28 = arith.constant 0 : index
    %36 = vector.load %arg10[%c0_27, %c0_28] : memref<16x128xf32, #tpu.memory_space<vmem>>, vector<16x128xf32>
    %c0_29 = arith.constant 0 : index
    %c0_30 = arith.constant 0 : index
    %37 = vector.load %arg11[%c0_29, %c0_30] : memref<16x128xf32, #tpu.memory_space<vmem>>, vector<16x128xf32>
    %c0_i32_31 = arith.constant 0 : i32
    %c16_i32 = arith.constant 16 : i32
    %38 = arith.muli %c0_i32_31, %c16_i32 : i32
    %39 = tpu.assume_multiple %38, 16 : i32
    %40 = arith.index_cast %39 : i32 to index
    %c0_32 = arith.constant 0 : index
    %41 = vector.load %arg9[%40, %c0_32] : memref<64x512xbf16, #tpu.memory_space<vmem>>, vector<16x512xbf16>
    %42 = arith.extf %41 : vector<16x512xbf16> to vector<16x512xf32>
    %43 = arith.truncf %36 : vector<16x128xf32> to vector<16x128xbf16>
    %c0_33 = arith.constant 0 : index
    %c0_34 = arith.constant 0 : index
    %44 = vector.load %arg4[%c0_33, %c0_34] : memref<128x512xbf16, #tpu.memory_space<vmem>>, vector<128x512xbf16>
    %cst_35 = arith.constant dense<0.000000e+00> : vector<16x512xf32>
    %45 = tpu.matmul %43, %44, %cst_35 {dimension_numbers = #tpu.dot_dimension_numbers<[1], [0], [0], [1], [0, 0, 1, 1], [], []>} : vector<16x128xbf16>, vector<128x512xbf16>, vector<16x512xf32> -> vector<16x512xf32>
    %46 = arith.addf %42, %45 : vector<16x512xf32>
    %47 = vector.extract_strided_slice %46 {offsets = [0, 0], sizes = [16, 128], strides = [1, 1]} : vector<16x512xf32> to vector<16x128xf32>
    %cst_36 = arith.constant 5.000000e-01 : f32
    %48 = vector.broadcast %cst_36 : f32 to vector<16x128xf32>
    %49 = arith.mulf %48, %47 : vector<16x128xf32>
    %50 = math.tanh %49 : vector<16x128xf32>
    %cst_37 = arith.constant 1.000000e+00 : f32
    %51 = vector.broadcast %cst_37 : f32 to vector<16x128xf32>
    %52 = arith.addf %51, %50 : vector<16x128xf32>
    %cst_38 = arith.constant 5.000000e-01 : f32
    %53 = vector.broadcast %cst_38 : f32 to vector<16x128xf32>
    %54 = arith.mulf %53, %52 : vector<16x128xf32>
    %55 = vector.extract_strided_slice %46 {offsets = [0, 128], sizes = [16, 128], strides = [1, 1]} : vector<16x512xf32> to vector<16x128xf32>
    %cst_39 = arith.constant 5.000000e-01 : f32
    %56 = vector.broadcast %cst_39 : f32 to vector<16x128xf32>
    %57 = arith.mulf %56, %55 : vector<16x128xf32>
    %58 = math.tanh %57 : vector<16x128xf32>
    %cst_40 = arith.constant 1.000000e+00 : f32
    %59 = vector.broadcast %cst_40 : f32 to vector<16x128xf32>
    %60 = arith.addf %59, %58 : vector<16x128xf32>
    %cst_41 = arith.constant 5.000000e-01 : f32
    %61 = vector.broadcast %cst_41 : f32 to vector<16x128xf32>
    %62 = arith.mulf %61, %60 : vector<16x128xf32>
    %63 = vector.extract_strided_slice %46 {offsets = [0, 256], sizes = [16, 128], strides = [1, 1]} : vector<16x512xf32> to vector<16x128xf32>
    %64 = math.tanh %63 : vector<16x128xf32>
    %65 = vector.extract_strided_slice %46 {offsets = [0, 384], sizes = [16, 128], strides = [1, 1]} : vector<16x512xf32> to vector<16x128xf32>
    %cst_42 = arith.constant 5.000000e-01 : f32
    %66 = vector.broadcast %cst_42 : f32 to vector<16x128xf32>
    %67 = arith.mulf %66, %65 : vector<16x128xf32>
    %68 = math.tanh %67 : vector<16x128xf32>
    %cst_43 = arith.constant 1.000000e+00 : f32
    %69 = vector.broadcast %cst_43 : f32 to vector<16x128xf32>
    %70 = arith.addf %69, %68 : vector<16x128xf32>
    %cst_44 = arith.constant 5.000000e-01 : f32
    %71 = vector.broadcast %cst_44 : f32 to vector<16x128xf32>
    %72 = arith.mulf %71, %70 : vector<16x128xf32>
    %73 = arith.mulf %62, %37 : vector<16x128xf32>
    %74 = arith.mulf %54, %64 : vector<16x128xf32>
    %75 = arith.addf %73, %74 : vector<16x128xf32>
    %76 = math.tanh %75 : vector<16x128xf32>
    %77 = arith.mulf %72, %76 : vector<16x128xf32>
    %c1_i32 = arith.constant 1 : i32
    %c16_i32_45 = arith.constant 16 : i32
    %78 = arith.muli %c1_i32, %c16_i32_45 : i32
    %79 = tpu.assume_multiple %78, 16 : i32
    %80 = arith.index_cast %79 : i32 to index
    %c0_46 = arith.constant 0 : index
    %81 = vector.load %arg9[%80, %c0_46] : memref<64x512xbf16, #tpu.memory_space<vmem>>, vector<16x512xbf16>
    %82 = arith.extf %81 : vector<16x512xbf16> to vector<16x512xf32>
    %83 = arith.truncf %77 : vector<16x128xf32> to vector<16x128xbf16>
    %c0_47 = arith.constant 0 : index
    %c0_48 = arith.constant 0 : index
    %84 = vector.load %arg4[%c0_47, %c0_48] : memref<128x512xbf16, #tpu.memory_space<vmem>>, vector<128x512xbf16>
    %cst_49 = arith.constant dense<0.000000e+00> : vector<16x512xf32>
    %85 = tpu.matmul %83, %84, %cst_49 {dimension_numbers = #tpu.dot_dimension_numbers<[1], [0], [0], [1], [0, 0, 1, 1], [], []>} : vector<16x128xbf16>, vector<128x512xbf16>, vector<16x512xf32> -> vector<16x512xf32>
    %86 = arith.addf %82, %85 : vector<16x512xf32>
    %87 = vector.extract_strided_slice %86 {offsets = [0, 0], sizes = [16, 128], strides = [1, 1]} : vector<16x512xf32> to vector<16x128xf32>
    %cst_50 = arith.constant 5.000000e-01 : f32
    %88 = vector.broadcast %cst_50 : f32 to vector<16x128xf32>
    %89 = arith.mulf %88, %87 : vector<16x128xf32>
    %90 = math.tanh %89 : vector<16x128xf32>
    %cst_51 = arith.constant 1.000000e+00 : f32
    %91 = vector.broadcast %cst_51 : f32 to vector<16x128xf32>
    %92 = arith.addf %91, %90 : vector<16x128xf32>
    %cst_52 = arith.constant 5.000000e-01 : f32
    %93 = vector.broadcast %cst_52 : f32 to vector<16x128xf32>
    %94 = arith.mulf %93, %92 : vector<16x128xf32>
    %95 = vector.extract_strided_slice %86 {offsets = [0, 128], sizes = [16, 128], strides = [1, 1]} : vector<16x512xf32> to vector<16x128xf32>
    %cst_53 = arith.constant 5.000000e-01 : f32
    %96 = vector.broadcast %cst_53 : f32 to vector<16x128xf32>
    %97 = arith.mulf %96, %95 : vector<16x128xf32>
    %98 = math.tanh %97 : vector<16x128xf32>
    %cst_54 = arith.constant 1.000000e+00 : f32
    %99 = vector.broadcast %cst_54 : f32 to vector<16x128xf32>
    %100 = arith.addf %99, %98 : vector<16x128xf32>
    %cst_55 = arith.constant 5.000000e-01 : f32
    %101 = vector.broadcast %cst_55 : f32 to vector<16x128xf32>
    %102 = arith.mulf %101, %100 : vector<16x128xf32>
    %103 = vector.extract_strided_slice %86 {offsets = [0, 256], sizes = [16, 128], strides = [1, 1]} : vector<16x512xf32> to vector<16x128xf32>
    %104 = math.tanh %103 : vector<16x128xf32>
    %105 = vector.extract_strided_slice %86 {offsets = [0, 384], sizes = [16, 128], strides = [1, 1]} : vector<16x512xf32> to vector<16x128xf32>
    %cst_56 = arith.constant 5.000000e-01 : f32
    %106 = vector.broadcast %cst_56 : f32 to vector<16x128xf32>
    %107 = arith.mulf %106, %105 : vector<16x128xf32>
    %108 = math.tanh %107 : vector<16x128xf32>
    %cst_57 = arith.constant 1.000000e+00 : f32
    %109 = vector.broadcast %cst_57 : f32 to vector<16x128xf32>
    %110 = arith.addf %109, %108 : vector<16x128xf32>
    %cst_58 = arith.constant 5.000000e-01 : f32
    %111 = vector.broadcast %cst_58 : f32 to vector<16x128xf32>
    %112 = arith.mulf %111, %110 : vector<16x128xf32>
    %113 = arith.mulf %102, %75 : vector<16x128xf32>
    %114 = arith.mulf %94, %104 : vector<16x128xf32>
    %115 = arith.addf %113, %114 : vector<16x128xf32>
    %116 = math.tanh %115 : vector<16x128xf32>
    %117 = arith.mulf %112, %116 : vector<16x128xf32>
    %c2_i32 = arith.constant 2 : i32
    %c16_i32_59 = arith.constant 16 : i32
    %118 = arith.muli %c2_i32, %c16_i32_59 : i32
    %119 = tpu.assume_multiple %118, 16 : i32
    %120 = arith.index_cast %119 : i32 to index
    %c0_60 = arith.constant 0 : index
    %121 = vector.load %arg9[%120, %c0_60] : memref<64x512xbf16, #tpu.memory_space<vmem>>, vector<16x512xbf16>
    %122 = arith.extf %121 : vector<16x512xbf16> to vector<16x512xf32>
    %123 = arith.truncf %117 : vector<16x128xf32> to vector<16x128xbf16>
    %c0_61 = arith.constant 0 : index
    %c0_62 = arith.constant 0 : index
    %124 = vector.load %arg4[%c0_61, %c0_62] : memref<128x512xbf16, #tpu.memory_space<vmem>>, vector<128x512xbf16>
    %cst_63 = arith.constant dense<0.000000e+00> : vector<16x512xf32>
    %125 = tpu.matmul %123, %124, %cst_63 {dimension_numbers = #tpu.dot_dimension_numbers<[1], [0], [0], [1], [0, 0, 1, 1], [], []>} : vector<16x128xbf16>, vector<128x512xbf16>, vector<16x512xf32> -> vector<16x512xf32>
    %126 = arith.addf %122, %125 : vector<16x512xf32>
    %127 = vector.extract_strided_slice %126 {offsets = [0, 0], sizes = [16, 128], strides = [1, 1]} : vector<16x512xf32> to vector<16x128xf32>
    %cst_64 = arith.constant 5.000000e-01 : f32
    %128 = vector.broadcast %cst_64 : f32 to vector<16x128xf32>
    %129 = arith.mulf %128, %127 : vector<16x128xf32>
    %130 = math.tanh %129 : vector<16x128xf32>
    %cst_65 = arith.constant 1.000000e+00 : f32
    %131 = vector.broadcast %cst_65 : f32 to vector<16x128xf32>
    %132 = arith.addf %131, %130 : vector<16x128xf32>
    %cst_66 = arith.constant 5.000000e-01 : f32
    %133 = vector.broadcast %cst_66 : f32 to vector<16x128xf32>
    %134 = arith.mulf %133, %132 : vector<16x128xf32>
    %135 = vector.extract_strided_slice %126 {offsets = [0, 128], sizes = [16, 128], strides = [1, 1]} : vector<16x512xf32> to vector<16x128xf32>
    %cst_67 = arith.constant 5.000000e-01 : f32
    %136 = vector.broadcast %cst_67 : f32 to vector<16x128xf32>
    %137 = arith.mulf %136, %135 : vector<16x128xf32>
    %138 = math.tanh %137 : vector<16x128xf32>
    %cst_68 = arith.constant 1.000000e+00 : f32
    %139 = vector.broadcast %cst_68 : f32 to vector<16x128xf32>
    %140 = arith.addf %139, %138 : vector<16x128xf32>
    %cst_69 = arith.constant 5.000000e-01 : f32
    %141 = vector.broadcast %cst_69 : f32 to vector<16x128xf32>
    %142 = arith.mulf %141, %140 : vector<16x128xf32>
    %143 = vector.extract_strided_slice %126 {offsets = [0, 256], sizes = [16, 128], strides = [1, 1]} : vector<16x512xf32> to vector<16x128xf32>
    %144 = math.tanh %143 : vector<16x128xf32>
    %145 = vector.extract_strided_slice %126 {offsets = [0, 384], sizes = [16, 128], strides = [1, 1]} : vector<16x512xf32> to vector<16x128xf32>
    %cst_70 = arith.constant 5.000000e-01 : f32
    %146 = vector.broadcast %cst_70 : f32 to vector<16x128xf32>
    %147 = arith.mulf %146, %145 : vector<16x128xf32>
    %148 = math.tanh %147 : vector<16x128xf32>
    %cst_71 = arith.constant 1.000000e+00 : f32
    %149 = vector.broadcast %cst_71 : f32 to vector<16x128xf32>
    %150 = arith.addf %149, %148 : vector<16x128xf32>
    %cst_72 = arith.constant 5.000000e-01 : f32
    %151 = vector.broadcast %cst_72 : f32 to vector<16x128xf32>
    %152 = arith.mulf %151, %150 : vector<16x128xf32>
    %153 = arith.mulf %142, %115 : vector<16x128xf32>
    %154 = arith.mulf %134, %144 : vector<16x128xf32>
    %155 = arith.addf %153, %154 : vector<16x128xf32>
    %156 = math.tanh %155 : vector<16x128xf32>
    %157 = arith.mulf %152, %156 : vector<16x128xf32>
    %c3_i32 = arith.constant 3 : i32
    %c16_i32_73 = arith.constant 16 : i32
    %158 = arith.muli %c3_i32, %c16_i32_73 : i32
    %159 = tpu.assume_multiple %158, 16 : i32
    %160 = arith.index_cast %159 : i32 to index
    %c0_74 = arith.constant 0 : index
    %161 = vector.load %arg9[%160, %c0_74] : memref<64x512xbf16, #tpu.memory_space<vmem>>, vector<16x512xbf16>
    %162 = arith.extf %161 : vector<16x512xbf16> to vector<16x512xf32>
    %163 = arith.truncf %157 : vector<16x128xf32> to vector<16x128xbf16>
    %c0_75 = arith.constant 0 : index
    %c0_76 = arith.constant 0 : index
    %164 = vector.load %arg4[%c0_75, %c0_76] : memref<128x512xbf16, #tpu.memory_space<vmem>>, vector<128x512xbf16>
    %cst_77 = arith.constant dense<0.000000e+00> : vector<16x512xf32>
    %165 = tpu.matmul %163, %164, %cst_77 {dimension_numbers = #tpu.dot_dimension_numbers<[1], [0], [0], [1], [0, 0, 1, 1], [], []>} : vector<16x128xbf16>, vector<128x512xbf16>, vector<16x512xf32> -> vector<16x512xf32>
    %166 = arith.addf %162, %165 : vector<16x512xf32>
    %167 = vector.extract_strided_slice %166 {offsets = [0, 0], sizes = [16, 128], strides = [1, 1]} : vector<16x512xf32> to vector<16x128xf32>
    %cst_78 = arith.constant 5.000000e-01 : f32
    %168 = vector.broadcast %cst_78 : f32 to vector<16x128xf32>
    %169 = arith.mulf %168, %167 : vector<16x128xf32>
    %170 = math.tanh %169 : vector<16x128xf32>
    %cst_79 = arith.constant 1.000000e+00 : f32
    %171 = vector.broadcast %cst_79 : f32 to vector<16x128xf32>
    %172 = arith.addf %171, %170 : vector<16x128xf32>
    %cst_80 = arith.constant 5.000000e-01 : f32
    %173 = vector.broadcast %cst_80 : f32 to vector<16x128xf32>
    %174 = arith.mulf %173, %172 : vector<16x128xf32>
    %175 = vector.extract_strided_slice %166 {offsets = [0, 128], sizes = [16, 128], strides = [1, 1]} : vector<16x512xf32> to vector<16x128xf32>
    %cst_81 = arith.constant 5.000000e-01 : f32
    %176 = vector.broadcast %cst_81 : f32 to vector<16x128xf32>
    %177 = arith.mulf %176, %175 : vector<16x128xf32>
    %178 = math.tanh %177 : vector<16x128xf32>
    %cst_82 = arith.constant 1.000000e+00 : f32
    %179 = vector.broadcast %cst_82 : f32 to vector<16x128xf32>
    %180 = arith.addf %179, %178 : vector<16x128xf32>
    %cst_83 = arith.constant 5.000000e-01 : f32
    %181 = vector.broadcast %cst_83 : f32 to vector<16x128xf32>
    %182 = arith.mulf %181, %180 : vector<16x128xf32>
    %183 = vector.extract_strided_slice %166 {offsets = [0, 256], sizes = [16, 128], strides = [1, 1]} : vector<16x512xf32> to vector<16x128xf32>
    %184 = math.tanh %183 : vector<16x128xf32>
    %185 = vector.extract_strided_slice %166 {offsets = [0, 384], sizes = [16, 128], strides = [1, 1]} : vector<16x512xf32> to vector<16x128xf32>
    %cst_84 = arith.constant 5.000000e-01 : f32
    %186 = vector.broadcast %cst_84 : f32 to vector<16x128xf32>
    %187 = arith.mulf %186, %185 : vector<16x128xf32>
    %188 = math.tanh %187 : vector<16x128xf32>
    %cst_85 = arith.constant 1.000000e+00 : f32
    %189 = vector.broadcast %cst_85 : f32 to vector<16x128xf32>
    %190 = arith.addf %189, %188 : vector<16x128xf32>
    %cst_86 = arith.constant 5.000000e-01 : f32
    %191 = vector.broadcast %cst_86 : f32 to vector<16x128xf32>
    %192 = arith.mulf %191, %190 : vector<16x128xf32>
    %193 = arith.mulf %182, %155 : vector<16x128xf32>
    %194 = arith.mulf %174, %184 : vector<16x128xf32>
    %195 = arith.addf %193, %194 : vector<16x128xf32>
    %196 = math.tanh %195 : vector<16x128xf32>
    %197 = arith.mulf %192, %196 : vector<16x128xf32>
    %c4_i32 = arith.constant 4 : i32
    %c0_87 = arith.constant 0 : index
    %c0_88 = arith.constant 0 : index
    %198 = vector.load %arg10[%c0_87, %c0_88] : memref<16x128xf32, #tpu.memory_space<vmem>>, vector<16x128xf32>
    tpu.vector_store %arg10[%c0_87, %c0_88], %197 {strides = array<i32>} : memref<16x128xf32, #tpu.memory_space<vmem>>, vector<16x128xf32>,
    %c0_89 = arith.constant 0 : index
    %c0_90 = arith.constant 0 : index
    %199 = vector.load %arg11[%c0_89, %c0_90] : memref<16x128xf32, #tpu.memory_space<vmem>>, vector<16x128xf32>
    tpu.vector_store %arg11[%c0_89, %c0_90], %195 {strides = array<i32>} : memref<16x128xf32, #tpu.memory_space<vmem>>, vector<16x128xf32>,
    %c1_i32_91 = arith.constant 1 : i32
    %200 = arith.cmpi eq, %arg1, %c1_i32_91 : i32
    %201 = arith.extui %200 : i1 to i32
    %c0_i32_92 = arith.constant 0 : i32
    %202 = arith.cmpi ne, %201, %c0_i32_92 : i32
    scf.if %202 {
      %c0_93 = arith.constant 0 : index
      %c0_94 = arith.constant 0 : index
      %203 = vector.load %arg6[%c0_93, %c0_94] : memref<1x128xf32, #tpu.memory_space<vmem>>, vector<1x128xf32>
      %204 = vector.broadcast %203 : vector<1x128xf32> to vector<16x128xf32>
      %205 = arith.mulf %197, %204 : vector<16x128xf32>
      %cst_95 = arith.constant dense<0.000000e+00> : vector<16xf32>
      %206 = vector.multi_reduction <add>, %205, %cst_95 [1] : vector<16x128xf32> to vector<16xf32>
      %207 = vector.shape_cast %206 : vector<16xf32> to vector<16x1xf32>
      %c0_96 = arith.constant 0 : index
      %c0_97 = arith.constant 0 : index
      %208 = vector.load %arg7[%c0_96, %c0_97] : memref<1x1xf32, #tpu.memory_space<vmem>>, vector<1x1xf32>
      %209 = vector.broadcast %208 : vector<1x1xf32> to vector<16x1xf32>
      %210 = arith.addf %207, %209 : vector<16x1xf32>
      %211 = math.tanh %210 : vector<16x1xf32>
      %c0_98 = arith.constant 0 : index
      %c0_99 = arith.constant 0 : index
      %212 = vector.load %arg8[%c0_98, %c0_99] : memref<16x1xf32, #tpu.memory_space<vmem>>, vector<16x1xf32>
      tpu.vector_store %arg8[%c0_98, %c0_99], %211 {strides = array<i32>} : memref<16x1xf32, #tpu.memory_space<vmem>>, vector<16x1xf32>,
    } else {
    }
    return
  }
  func.func @transform_0(%arg0: i32, %arg1: i32) -> (i32, i32, i32) {
    %c0_i32 = arith.constant 0 : i32
    %c0_i32_0 = arith.constant 0 : i32
    return %arg1, %arg0, %c0_i32 : i32, i32, i32
  }
  func.func @transform_1(%arg0: i32, %arg1: i32) -> (i32, i32) {
    %c0_i32 = arith.constant 0 : i32
    %c0_i32_0 = arith.constant 0 : i32
    %c0_i32_1 = arith.constant 0 : i32
    return %c0_i32, %c0_i32_0 : i32, i32
  }
  func.func @transform_2(%arg0: i32, %arg1: i32) -> (i32, i32) {
    %c0_i32 = arith.constant 0 : i32
    %c0_i32_0 = arith.constant 0 : i32
    %c0_i32_1 = arith.constant 0 : i32
    return %c0_i32, %c0_i32_0 : i32, i32
  }
  func.func @transform_3(%arg0: i32, %arg1: i32) -> (i32, i32) {
    %c0_i32 = arith.constant 0 : i32
    %c0_i32_0 = arith.constant 0 : i32
    %c0_i32_1 = arith.constant 0 : i32
    return %c0_i32, %c0_i32_0 : i32, i32
  }
  func.func @transform_4(%arg0: i32, %arg1: i32) -> (i32, i32) {
    %c0_i32 = arith.constant 0 : i32
    %c0_i32_0 = arith.constant 0 : i32
    %c0_i32_1 = arith.constant 0 : i32
    return %c0_i32, %c0_i32_0 : i32, i32
  }
  func.func @transform_5(%arg0: i32, %arg1: i32) -> (i32, i32) {
    %c0_i32 = arith.constant 0 : i32
    %c0_i32_0 = arith.constant 0 : i32
    %c0_i32_1 = arith.constant 0 : i32
    return %c0_i32, %c0_i32_0 : i32, i32
  }
  func.func @transform_6(%arg0: i32, %arg1: i32) -> (i32, i32) {
    %c0_i32 = arith.constant 0 : i32
    %c0_i32_0 = arith.constant 0 : i32
    return %arg0, %c0_i32 : i32, i32
  }
}

</mosaic_0001>

<bundles_post_ra>
// kernel: tpu_custom_call.1
= control target key start
LH: loop header
LB: loop body
LE: loop exit
PB: predicated region body
PF: predicated region fallthrough
CT: control target
= control target key end

     0   :  { %s3287_s0 = inlined_call_operand.hbm [shape: bf16[8,16,64], index: 0, kind: input, shape index: {}]   ;;  %s3288_s1 = inlined_call_operand.hbm [shape: bf16[64,512], index: 1, kind: input, shape index: {}]   ;;  %s3289_s2 = inlined_call_operand.hbm [shape: bf16[128,512], index: 2, kind: input, shape index: {}]   ;;  %s3290_s3 = inlined_call_operand.vmem [shape: f32[1,512], index: 3, kind: input, shape index: {}]   ;;  %s3291_s4 = inlined_call_operand.vmem [shape: f32[1,128], index: 4, kind: input, shape index: {}]   ;;  %s3292_s5 = inlined_call_operand.<no memory space> [shape: f32[1,1], index: 5, kind: input, shape index: {}]   ;;  %s3293_s6 = inlined_call_operand.vmem [shape: f32[16,1], index: 6, kind: output, shape index: {}]  }
   0x1   :  { %v11_v0 = vstv %s3292_s5 }
   0x2   :  { %12 = vst [vmem:[#allocation5] sm:$0x1] %v11_v0 }
   0x3   :  { %13 = vsyncpa [#allocation7], 0 }
   0x4   :  { %15 = vsyncpa [#allocation7 + $0x1], 0 }
   0x5   :  { %16 = vsyncpa [#allocation9], 0  ;;  %s2639_s23 = smov 0   ;;  %s2641_s24 = smov 0  }
   0x6   :  { %s2643_s25 = smov 0   ;;  %s2645_s26 = smov 0  }
   0x7   :  { %s2647_s27 = smov 0   ;;  %s2649_s28 = smov 0  }
   0x8 LB: > { %s2071_s5 = sadd.s32 4294967295, %s2590_s28   ;;  %p56_p0 = scmp.ne.s32.totalorder %s2574_s24, %s2570_s23  ;;  %s2590_s28 = sphi %s2649_s28, %s22_s28   ;;  %s2586_s27 = sphi %s2647_s27, %s3331_s27   ;;  %s2582_s26 = sphi %s2645_s26, %s3330_s26   ;;  %s2578_s25 = sphi %s2643_s25, %s3329_s25   ;;  %s2574_s24 = sphi %s2641_s24, %s3328_s24   ;;  %s2570_s23 = sphi %s2639_s23, %s3327_s23  }
   0x9   : > { %p2669_p1 = scmp.eq.s32.totalorder %s2071_s5, 0  ;;  %p2072_p2 = scmp.ge.s32.totalorder %s2590_s28, 1 }
   0xa   : > { %p198_p3 = scmp.lt.s32.totalorder %s2590_s28, 3  ;;  %s2592_s8 = smov [#allocation8]  }
   0xb   : > { %s3306_s29 = scalar_select %p2669_p1, 1, 0 }
   0xc   : > { %p2677_p4 = por %p2669_p1, %p56_p0  ;;  %p2681_p5 = pnand %p2072_p2, %p198_p3 }
   0xd   : > { %s210_s9 = sshll.u32 %s2592_s8, 4  ;;  %s2593_s11 = smov [#allocation10]   ;;  %s211_s9 = int_to_ptr.vmem [resolvable:$true] %s210_s9 }
   0xe   : > { %s3307_s30 = scalar_select %p2677_p4, 1, 0 }
   0xf   : > { %s3308_s7 = scalar_select %p2681_p5, 1, 0 }
  0x10   : > { %p2218_p6 = pneg %p2681_p5  ;;  %s223_s12 = sshll.u32 %s2593_s11, 4  ;;  %s2693_s12 = int_to_ptr.vmem [resolvable:$true] %s223_s12 }
  0x11   : > { %s2450_s15 = scalar_lea.hbm %s3288_s1, 2048 }
  0x12   : > { %p2689_p7 = pnand %p2218_p6, %p2669_p1  ;;  %p2451_p8 = scmp.ne.s32.totalorder %s3288_s1, %s2450_s15 }
  0x13   : > { %p2457_p12 = scmp.lt.u32.totalorder %s2450_s15, %s3288_s1 }
  0x14   : > { %p2452_p9 = pneg %p2689_p7 }
  0x16   : > { %p2453_p10 = pnand %p2452_p9, %p2451_p8 }
  0x18   : > { %p2454_p11 = pneg %p2453_p10 }
  0x1a   : > { %p2459_p13 = pnand %p2457_p12, %p2454_p11 }
  0x1c   : > { %2462 = shalt.err (!%p2459_p13)
}
  0x1d   : > { %s2463_s20 = scalar_lea.vmem %s211_s9, 2048  ;;  %p2471_p6 = scmp.lt.s32.totalorder %s211_s9, %s211_s9 }
  0x1e   : > { %p2464_p0 = scmp.ne.s32.totalorder %s211_s9, %s2463_s20  ;;  %p2472_p1 = scmp.lt.s32.totalorder %s2463_s20, %s2463_s20 }
  0x20   : > { %p2466_p2 = pnand %p2464_p0, %p2452_p9  ;;  %p2473_p4 = por %p2472_p1, %p2471_p6 }
  0x22   : > { %p2467_p3 = pneg %p2466_p2 }
  0x24   : > { %p2474_p5 = pnand %p2473_p4, %p2467_p3 }
  0x26   : > { %2477 = shalt.err (!%p2474_p5)
}
  0x27   : > { %s2594_s21 = smov 256   ;;  %s2595_s22 = smov 16  }
  0x28   : > { %2221 = dma.hbm_to_vmem [thread:$0]  (!%p2689_p7), %s3288_s1, 2048, %s211_s9, [#allocation9], %s2594_s21, %s2594_s21, %s2595_s22  }
  0x29   : > { %s2478_s13 = scalar_lea.hbm %s3289_s2, 4096 }
  0x2a   : > { %p2479_p8 = scmp.ne.s32.totalorder %s3289_s2, %s2478_s13  ;;  %p2485_p5 = scmp.lt.u32.totalorder %s2478_s13, %s3289_s2 }
  0x2c   : > { %p2481_p1 = pnand %p2479_p8, %p2452_p9 }
  0x2e   : > { %p2482_p4 = pneg %p2481_p1 }
  0x30   : > { %p2487_p10 = pnand %p2485_p5, %p2482_p4 }
  0x32   : > { %2490 = shalt.err (!%p2487_p10)
}
  0x33   : > { %s2491_s9 = scalar_lea.vmem %s2693_s12, 4096  ;;  %p2499_p0 = scmp.lt.s32.totalorder %s2693_s12, %s2693_s12 }
  0x34   : > { %p2492_p11 = scmp.ne.s32.totalorder %s2693_s12, %s2491_s9  ;;  %p2500_p2 = scmp.lt.s32.totalorder %s2491_s9, %s2491_s9 }
  0x36   : > { %p2494_p12 = pnand %p2492_p11, %p2452_p9  ;;  %p2501_p3 = por %p2500_p2, %p2499_p0 }
  0x38   : > { %p2495_p13 = pneg %p2494_p12 }
  0x3a   : > { %p2502_p6 = pnand %p2501_p3, %p2495_p13 }
  0x3c   : > { %2505 = shalt.err (!%p2502_p6)
}
  0x3d   : > { %2224 = dma.hbm_to_vmem [thread:$0]  (!%p2689_p7), %s3289_s2, 4096, %s2693_s12, [#allocation9], %s2594_s21, %s2594_s21, %s2595_s22  }
  0x3e   : > { %s31_s20 = sadd.s32 1, %s2586_s27  ;;  %s43_s23 = sadd.s32 1, %s2578_s25 }
  0x3f   : > { %p32_p9 = scmp.ge.s32.totalorder %s31_s20, 2  ;;  %p50_p8 = scmp.ne.s32.totalorder %s2578_s25, %s2574_s24 }
  0x40   : > { %p51_p1 = scmp.eq.s32.totalorder %s2590_s28, 0  ;;  %p2231_p4 = scmp.lt.s32.totalorder %s2590_s28, 2 }
  0x41   : > { %s3333_s20 = smov (%p32_p9, %s31_s20), 0  ;;  %s246_s10 = sand.u32 1, %s2578_s25  }
  0x42   : > { %p52_p5 = por %p51_p1, %p50_p8  ;;  %s38_s5 = ssub.s32 %s2586_s27, %s3333_s20 }
  0x43   : > { %p41_p10 = scmp.eq.s32.totalorder %s38_s5, 0  ;;  %s2076_s8 = sshll.u32 %s246_s10, 5 }
  0x44   : > { %s2207_s11 = sshll.u32 %s2586_s27, 9  ;;  %s250_s22 = scalar_lea.vmem [#allocation6], %s2076_s8 }
  0x45   : > { %s2755_s13 = scalar_select %p41_p10, %s2578_s25, %s43_s23  }
  0x46   : > { %s2760_s21 = scalar_lea.hbm %s3287_s0, %s2207_s11  ;;  %s260_s15 = sshll.u32 %s250_s22, 4  ;;  %s2762_s15 = int_to_ptr.vmem [resolvable:$true] %s260_s15 }
  0x47   : > { %p2766_p7 = pnand %p2231_p4, %p52_p5  ;;  %s2770_s17 = scalar_lea.sflag [#allocation7], %s246_s10 }
  0x48   : > { %s2506_s9 = scalar_lea.hbm %s2760_s21, 512  ;;  %s2511_s23 = scalar_lea.hbm %s3287_s0, 1024 }
  0x49   : > { %p2507_p11 = scmp.ne.s32.totalorder %s2760_s21, %s2506_s9  ;;  %p2508_p12 = pneg %p2766_p7 }
  0x4a   : > { %p2512_p2 = scmp.lt.u32.totalorder %s2760_s21, %s3287_s0  ;;  %p2513_p3 = scmp.lt.u32.totalorder %s2511_s23, %s2506_s9 }
  0x4b   : > { %p2509_p13 = pnand %p2508_p12, %p2507_p11  ;;  %p2515_p9 = scmp.lt.u32.totalorder %s2506_s9, %s2760_s21 }
  0x4c   : > { %p2514_p6 = por %p2513_p3, %p2512_p2 }
  0x4d   : > { %p2510_p0 = pneg %p2509_p13 }
  0x4e   : > { %p2516_p8 = por %p2515_p9, %p2514_p6 }
  0x50   : > { %p2517_p1 = pnand %p2516_p8, %p2510_p0 }
  0x52   : > { %2520 = shalt.err (!%p2517_p1)
}
  0x53   : > { %s2521_s10 = scalar_lea.vmem %s2762_s15, 512  ;;  %s2596_s11 = smov [#allocation6]  }
  0x54   : > { %p2522_p4 = scmp.ne.s32.totalorder %s2762_s15, %s2521_s10  ;;  %s2526_s14 = sshll.u32 %s2596_s11, 4  ;;  %s2527_s14 = int_to_ptr.vmem [resolvable:$false] %s2526_s14 }
  0x55   : > { %s2528_s12 = scalar_lea.vmem %s2527_s14, 1024  ;;  %p2529_p11 = scmp.lt.s32.totalorder %s2762_s15, %s2527_s14 }
  0x56   : > { %p2524_p5 = pnand %p2522_p4, %p2508_p12  ;;  %p2530_p13 = scmp.lt.s32.totalorder %s2528_s12, %s2521_s10 }
  0x58   : > { %p2525_p10 = pneg %p2524_p5  ;;  %p2531_p2 = por %p2530_p13, %p2529_p11 }
  0x5a   : > { %p2532_p3 = pnand %p2531_p2, %p2525_p10 }
  0x5c   : > { %2535 = shalt.err (!%p2532_p3)
}
  0x5d   : > { %s2597_s22 = smov 64   ;;  %s2598_s9 = smov 4  }
  0x5e   : > { %2228 = dma.hbm_to_vmem [thread:$0]  (!%p2766_p7), %s2760_s21, 512, %s2762_s15, %s2770_s17, %s2597_s22, %s2597_s22, %s2598_s9  }
  0x5f   : > { %p3311_p12 = scmp.ne.s32.totalorder %s3308_s7, 0 }
  0x61   : > { %272 = sbr.rel (%p3311_p12) target bundleno = 1391 (0x56f), region = 44 }
  0x68   : > { %s274_s18 = sand.u32 1, %s2574_s24   ;;  %p3312_p0 = scmp.ne.s32.totalorder %s3307_s30, 0 }
  0x69   : > { %s2081_s19 = sshll.u32 %s274_s18, 5  ;;  %s275_s23 = scalar_lea.sflag [#allocation7], %s274_s18 }
  0x6a   : > { %s2801_s5 = scalar_lea.vmem [#allocation6], %s2081_s19 }
  0x6b   : > { %2561 = dma.done.wait (%p3312_p0), %s275_s23, 512  }
  0x6c   : > { %2563 = vsyncadd (%p3312_p0), %s275_s23, 4294966784  ;;  %p3313_p6 = scmp.ne.s32.totalorder %s3306_s29, 0 }
  0x6e   : > { %2565 = dma.done.wait (%p3313_p6), [#allocation9], 6144  }
  0x6f   : > { %2567 = vsyncadd (%p3313_p6), [#allocation9], 4294961152  ;;  %p2084_p7 = scmp.ne.s32.totalorder %s2582_s26, 0 }
  0x70   : > { %v2599_v1 = vmov (!%p2084_p7), 0.0  }
  0x71   : > { %327 = sbr.rel (%p2084_p7) target bundleno = 120 (0x78), region = 60  ;;  %328 = vst [vmem:[#allocation3] sm:$0xff] (!%p2084_p7), %v2599_v1  ;;  %329 = vst [vmem:[#allocation3 + $0x8] sm:$0xff] (!%p2084_p7), %v2599_v1 }
  0x72   : > { %330 = vst [vmem:[#allocation4] sm:$0xff] (!%p2084_p7), %v2599_v1  ;;  %331 = vst [vmem:[#allocation4 + $0x8] sm:$0xff] (!%p2084_p7), %v2599_v1 }
  0x78 PF: > { %v2812_v2 = vld [vmem:[#allocation8 + $0x4] ss:$16 sps:$4 sm:$0xff]   ;;  %v2814_v3 = vld [vmem:[#allocation8 + $0xc] ss:$16 sps:$4 sm:$0xff]   ;;  %v3298_v4 = vmov 0   ;;  %vm457_vm0 = vcmask 523264   ;;  %v352_v58 = vlaneseq }
  0x79   : > { %493 = vmatprep.mubr.bf16.mxu0 %v3298_v4  ;;  %536 = vmatprep.mubr.bf16.mxu1 %v3298_v4  ;;  %v2819_v5 = vld [vmem:[#allocation8] ss:$16 sps:$4 sm:$0xff]   ;;  %v2821_v6 = vld [vmem:[#allocation8 + $0x8] ss:$16 sps:$4 sm:$0xff]   ;;  %v2824_v7 = vld [vmem:[#allocation8 + $0x24] ss:$16 sps:$4 sm:$0xff]  }
  0x7a   : > { %461 = vmatprep.subr.bf16.mxu0 %v2812_v2  ;;  %504 = vmatprep.subr.bf16.mxu1 %v2814_v3  ;;  %v2828_v8 = vld [vmem:[#allocation8 + $0x2c] ss:$16 sps:$4 sm:$0xff]   ;;  %v2830_v9 = vld [vmem:[#allocation8 + $0x20] ss:$16 sps:$4 sm:$0xff]   ;;  %v2833_v10 = vld [vmem:[#allocation8 + $0x28] ss:$16 sps:$4 sm:$0xff]  }
  0x7b   : > { %462 = vmatpush1.bf16.msra.mxu0 %v2819_v5  ;;  %505 = vmatpush1.bf16.msra.mxu1 %v2821_v6  ;;  %v2836_v11 = vld [vmem:[#allocation8 + $0x44] ss:$16 sps:$4 sm:$0xff]   ;;  %v2838_v12 = vld [vmem:[#allocation8 + $0x4c] ss:$16 sps:$4 sm:$0xff]   ;;  %v2840_v13 = vld [vmem:[#allocation8 + $0x40] ss:$16 sps:$4 sm:$0xff]  }
  0x7c   : > { %463 = vmatprep.subr.bf16.mxu0 %v2824_v7  ;;  %506 = vmatprep.subr.bf16.mxu1 %v2828_v8  ;;  %v2842_v14 = vld [vmem:[#allocation8 + $0x48] ss:$16 sps:$4 sm:$0xff]   ;;  %v2846_v15 = vld [vmem:[#allocation8 + $0x64] ss:$16 sps:$4 sm:$0xff]   ;;  %v2850_v16 = vld [vmem:[#allocation8 + $0x6c] ss:$16 sps:$4 sm:$0xff]  }
  0x7d   : > { %v2852_v17 = vld [vmem:[#allocation8 + $0x60] ss:$16 sps:$4 sm:$0xff]   ;;  %v2856_v18 = vld [vmem:[#allocation8 + $0x68] ss:$16 sps:$4 sm:$0xff]   ;;  %v2923_v22 = vld [vmem:[#allocation10 + $0x4] ss:$16 sps:$4 sm:$0xff]  }
  0x7e   : > { %v2314_v19 = vld [vmem:[%s2801_s5] sm:$0xff]   ;;  %v2315_v20 = vld [vmem:[%s2801_s5 + $0x8] sm:$0xff]   ;;  %v2316_v21 = vld [vmem:[%s2801_s5 + $0x10] sm:$0xff]   ;;  %v353_v59 = vshrl.u32 %v352_v58, 7  ;;  %p2199_p9 = scmp.ne.s32.totalorder %s2582_s26, 1 }
  0x7f   : > { %464 = vmatpush1.bf16.msra.mxu0 %v2830_v9  ;;  %507 = vmatpush1.bf16.msra.mxu1 %v2833_v10  ;;  %v2925_v23 = vld [vmem:[#allocation10 + $0xc] ss:$16 sps:$4 sm:$0xff]   ;;  %v2930_v25 = vld [vmem:[#allocation10] ss:$16 sps:$4 sm:$0xff]   ;;  %v2932_v26 = vld [vmem:[#allocation10 + $0x8] ss:$16 sps:$4 sm:$0xff]  }
  0x80   : > { %465 = vmatprep.subr.bf16.mxu0 %v2836_v11  ;;  %508 = vmatprep.subr.bf16.mxu1 %v2838_v12  ;;  %v2317_v24 = vld [vmem:[%s2801_s5 + $0x18] sm:$0xff]   ;;  %v2936_v27 = vld [vmem:[#allocation10 + $0x24] ss:$16 sps:$4 sm:$0xff]   ;;  %v2944_v29 = vld [vmem:[#allocation10 + $0x20] ss:$16 sps:$4 sm:$0xff]   ;;  %v354_v60 = vsub.s32 0, %v353_v59 }
  0x81   : > { %v2938_v28 = vld [vmem:[#allocation10 + $0x2c] ss:$16 sps:$4 sm:$0xff]   ;;  %v2946_v30 = vld [vmem:[#allocation10 + $0x28] ss:$16 sps:$4 sm:$0xff]   ;;  %v2950_v31 = vld [vmem:[#allocation10 + $0x44] ss:$16 sps:$4 sm:$0xff]  }
  0x82   : > { %v2952_v32 = vld [vmem:[#allocation10 + $0x4c] ss:$16 sps:$4 sm:$0xff]   ;;  %v2958_v33 = vld [vmem:[#allocation10 + $0x40] ss:$16 sps:$4 sm:$0xff]   ;;  %v2960_v34 = vld [vmem:[#allocation10 + $0x48] ss:$16 sps:$4 sm:$0xff]  }
  0x83   : > { %466 = vmatpush1.bf16.msra.mxu0 %v2840_v13  ;;  %509 = vmatpush1.bf16.msra.mxu1 %v2842_v14  ;;  %v2964_v35 = vld [vmem:[#allocation10 + $0x64] ss:$16 sps:$4 sm:$0xff]   ;;  %v2966_v36 = vld [vmem:[#allocation10 + $0x6c] ss:$16 sps:$4 sm:$0xff]   ;;  %v2970_v37 = vld [vmem:[#allocation10 + $0x60] ss:$16 sps:$4 sm:$0xff]  }
  0x84   : > { %467 = vmatprep.subr.bf16.mxu0 %v2846_v15  ;;  %510 = vmatprep.subr.bf16.mxu1 %v2850_v16  ;;  %v2972_v38 = vld [vmem:[#allocation10 + $0x68] ss:$16 sps:$4 sm:$0xff]   ;;  %v2976_v39 = vld [vmem:[#allocation10 + $0x84] ss:$16 sps:$4 sm:$0xff]   ;;  %v2978_v40 = vld [vmem:[#allocation10 + $0x8c] ss:$16 sps:$4 sm:$0xff]  }
  0x85   : > { %v2982_v41 = vld [vmem:[#allocation10 + $0x80] ss:$16 sps:$4 sm:$0xff]   ;;  %v2984_v42 = vld [vmem:[#allocation10 + $0x88] ss:$16 sps:$4 sm:$0xff]   ;;  %v2988_v43 = vld [vmem:[#allocation10 + $0xa4] ss:$16 sps:$4 sm:$0xff]  }
  0x86   : > { %v2990_v44 = vld [vmem:[#allocation10 + $0xac] ss:$16 sps:$4 sm:$0xff]   ;;  %v2994_v45 = vld [vmem:[#allocation10 + $0xa0] ss:$16 sps:$4 sm:$0xff]   ;;  %v2996_v46 = vld [vmem:[#allocation10 + $0xa8] ss:$16 sps:$4 sm:$0xff]  }
  0x87   : > { %468 = vmatpush1.bf16.msra.mxu0 %v2852_v17  ;;  %511 = vmatpush1.bf16.msra.mxu1 %v2856_v18  ;;  %v3000_v47 = vld [vmem:[#allocation10 + $0xc4] ss:$16 sps:$4 sm:$0xff]   ;;  %v3002_v48 = vld [vmem:[#allocation10 + $0xcc] ss:$16 sps:$4 sm:$0xff]   ;;  %v3006_v49 = vld [vmem:[#allocation10 + $0xc0] ss:$16 sps:$4 sm:$0xff]  }
  0x88   : > { %662 = vmatprep.subr.bf16.mxu0 %v2812_v2  ;;  %705 = vmatprep.subr.bf16.mxu1 %v2814_v3  ;;  %v3008_v50 = vld [vmem:[#allocation10 + $0xc8] ss:$16 sps:$4 sm:$0xff]   ;;  %v3012_v51 = vld [vmem:[#allocation10 + $0xe4] ss:$16 sps:$4 sm:$0xff]   ;;  %v3014_v52 = vld [vmem:[#allocation10 + $0xec] ss:$16 sps:$4 sm:$0xff]  }
  0x89   : > { %v3016_v53 = vld [vmem:[#allocation10 + $0xe0] ss:$16 sps:$4 sm:$0xff]   ;;  %v3020_v54 = vld [vmem:[#allocation10 + $0xe8] ss:$16 sps:$4 sm:$0xff]   ;;  %v362_v61 = vsub.s32 2, %v353_v59  ;;  %v366_v63 = vsub.s32 3, %v353_v59 }
  0x8a   : > { %2102 = vmatmul.mubr.msk.bf16.vlgmr.msra.gmra.mrb[0].mxu0 %vm457_vm0, %v2314_v19  ;;  %2103 = vmatmul.mubr.msk.bf16.vlgmr.msra.gmra.mrb[0].mxu1 %vm457_vm0, %v2314_v19  ;;  %v1158_v55 = vld [vmem:[#allocation3] sm:$0xff]  ;;  %v1159_v56 = vld [vmem:[#allocation3 + $0x8] sm:$0xff]  ;;  %v358_v0 = vsub.s32 1, %v353_v59  ;;  %vm1970_vm1 = vcmask (!%p2199_p9), 7168  }
  0x8b   : > { %663 = vmatpush1.bf16.msra.mxu0 %v2819_v5  ;;  %706 = vmatpush1.bf16.msra.mxu1 %v2821_v6  ;;  %v1177_v57 = vpack.c.bf16 %v1159_v56, %v1158_v55  ;;  %v332_v62 = vld [vmem:[%s3290_s3] sm:$0xf] }
  0x8c   : > { %664 = vmatprep.subr.bf16.mxu0 %v2824_v7  ;;  %707 = vmatprep.subr.bf16.mxu1 %v2828_v8  ;;  %v3065_v1 = vrot.slane %v332_v62, %v354_v60 }
  0x8d   : > { %694 = vmatprep.mubr.bf16.mxu0 %v3298_v4  ;;  %737 = vmatprep.mubr.bf16.mxu1 %v3298_v4 }
  0x8f   : > { %665 = vmatpush1.bf16.msra.mxu0 %v2830_v9  ;;  %708 = vmatpush1.bf16.msra.mxu1 %v2833_v10 }
  0x90   : > { %666 = vmatprep.subr.bf16.mxu0 %v2836_v11  ;;  %709 = vmatprep.subr.bf16.mxu1 %v2838_v12 }
  0x93   : > { %667 = vmatpush1.bf16.msra.mxu0 %v2840_v13  ;;  %710 = vmatpush1.bf16.msra.mxu1 %v2842_v14 }
  0x94   : > { %668 = vmatprep.subr.bf16.mxu0 %v2846_v15  ;;  %711 = vmatprep.subr.bf16.mxu1 %v2850_v16 }
  0x97   : > { %669 = vmatpush1.bf16.msra.mxu0 %v2852_v17  ;;  %712 = vmatpush1.bf16.msra.mxu1 %v2856_v18 }
  0x98   : > { %863 = vmatprep.subr.bf16.mxu0 %v2812_v2  ;;  %906 = vmatprep.subr.bf16.mxu1 %v2814_v3 }
  0x9a   : > { %2123 = vmatmul.mubr.msk.bf16.vlgmr.msra.gmra.mrb[4].mxu0 %vm457_vm0, %v2315_v20  ;;  %2124 = vmatmul.mubr.msk.bf16.vlgmr.msra.gmra.mrb[4].mxu1 %vm457_vm0, %v2315_v20 }
  0x9b   : > { %864 = vmatpush1.bf16.msra.mxu0 %v2819_v5  ;;  %907 = vmatpush1.bf16.msra.mxu1 %v2821_v6 }
  0x9c   : > { %865 = vmatprep.subr.bf16.mxu0 %v2824_v7  ;;  %908 = vmatprep.subr.bf16.mxu1 %v2828_v8 }
  0x9d   : > { %895 = vmatprep.mubr.bf16.mxu0 %v3298_v4  ;;  %938 = vmatprep.mubr.bf16.mxu1 %v3298_v4 }
  0x9f   : > { %866 = vmatpush1.bf16.msra.mxu0 %v2830_v9  ;;  %909 = vmatpush1.bf16.msra.mxu1 %v2833_v10 }
  0xa0   : > { %867 = vmatprep.subr.bf16.mxu0 %v2836_v11  ;;  %910 = vmatprep.subr.bf16.mxu1 %v2838_v12 }
  0xa3   : > { %868 = vmatpush1.bf16.msra.mxu0 %v2840_v13  ;;  %911 = vmatpush1.bf16.msra.mxu1 %v2842_v14 }
  0xa4   : > { %869 = vmatprep.subr.bf16.mxu0 %v2846_v15  ;;  %912 = vmatprep.subr.bf16.mxu1 %v2850_v16 }
  0xa7   : > { %870 = vmatpush1.bf16.msra.mxu0 %v2852_v17  ;;  %913 = vmatpush1.bf16.msra.mxu1 %v2856_v18 }
  0xa8   : > { %1064 = vmatprep.subr.bf16.mxu0 %v2812_v2  ;;  %1107 = vmatprep.subr.bf16.mxu1 %v2814_v3  ;;  %v3067_v2 = vrot.slane %v332_v62, %v362_v61  ;;  %v3069_v3 = vrot.slane %v332_v62, %v366_v63 }
  0xaa   : > { %2144 = vmatmul.mubr.msk.bf16.vlgmr.msra.gmra.mrb[8].mxu0 %vm457_vm0, %v2316_v21  ;;  %2145 = vmatmul.mubr.msk.bf16.vlgmr.msra.gmra.mrb[8].mxu1 %vm457_vm0, %v2316_v21 }
  0xab   : > { %1065 = vmatpush1.bf16.msra.mxu0 %v2819_v5  ;;  %1108 = vmatpush1.bf16.msra.mxu1 %v2821_v6  ;;  %v3071_v6 = vrot.slane %v332_v62, %v358_v0 }
  0xac   : > { %1066 = vmatprep.subr.bf16.mxu0 %v2824_v7  ;;  %1109 = vmatprep.subr.bf16.mxu1 %v2828_v8 }
  0xad   : > { %1096 = vmatprep.mubr.bf16.mxu0 %v3298_v4  ;;  %1139 = vmatprep.mubr.bf16.mxu1 %v3298_v4 }
  0xaf   : > { %1067 = vmatpush1.bf16.msra.mxu0 %v2830_v9  ;;  %1110 = vmatpush1.bf16.msra.mxu1 %v2833_v10 }
  0xb0   : > { %1068 = vmatprep.subr.bf16.mxu0 %v2836_v11  ;;  %1111 = vmatprep.subr.bf16.mxu1 %v2838_v12 }
  0xb3   : > { %1069 = vmatpush1.bf16.msra.mxu0 %v2840_v13  ;;  %1112 = vmatpush1.bf16.msra.mxu1 %v2842_v14 }
  0xb4   : > { %1070 = vmatprep.subr.bf16.mxu0 %v2846_v15  ;;  %1113 = vmatprep.subr.bf16.mxu1 %v2850_v16 }
  0xb7   : > { %1071 = vmatpush1.bf16.msra.mxu0 %v2852_v17  ;;  %1114 = vmatpush1.bf16.msra.mxu1 %v2856_v18 }
  0xb8   : > { %1370 = vmatprep.subr.bf16.mxu0 %v2923_v22  ;;  %1413 = vmatprep.subr.bf16.mxu1 %v2925_v23 }
  0xba   : > { %2165 = vmatmul.mubr.msk.bf16.vlgmr.msra.gmra.mrb[12].mxu0 %vm457_vm0, %v2317_v24  ;;  %2166 = vmatmul.mubr.msk.bf16.vlgmr.msra.gmra.mrb[12].mxu1 %vm457_vm0, %v2317_v24 }
  0xbb   : > { %1371 = vmatpush1.bf16.msra.mxu0 %v2930_v25  ;;  %1414 = vmatpush1.bf16.msra.mxu1 %v2932_v26 }
  0xbc   : > { %1372 = vmatprep.subr.bf16.mxu0 %v2936_v27  ;;  %1415 = vmatprep.subr.bf16.mxu1 %v2938_v28 }
  0xbd   : > { %1402 = vmatprep.mubr.bf16.mxu0 %v3298_v4  ;;  %1445 = vmatprep.mubr.bf16.mxu1 %v3298_v4 }
  0xbf   : > { %1373 = vmatpush1.bf16.msra.mxu0 %v2944_v29  ;;  %1416 = vmatpush1.bf16.msra.mxu1 %v2946_v30 }
  0xc0   : > { %1374 = vmatprep.subr.bf16.mxu0 %v2950_v31  ;;  %1417 = vmatprep.subr.bf16.mxu1 %v2952_v32 }
  0xc3   : > { %1375 = vmatpush1.bf16.msra.mxu0 %v2958_v33  ;;  %1418 = vmatpush1.bf16.msra.mxu1 %v2960_v34 }
  0xc4   : > { %1376 = vmatprep.subr.bf16.mxu0 %v2964_v35  ;;  %1419 = vmatprep.subr.bf16.mxu1 %v2966_v36 }
  0xc7   : > { %1377 = vmatpush1.bf16.msra.mxu0 %v2970_v37  ;;  %1420 = vmatpush1.bf16.msra.mxu1 %v2972_v38 }
  0xc8   : > { %1378 = vmatprep.subr.bf16.mxu0 %v2976_v39  ;;  %1421 = vmatprep.subr.bf16.mxu1 %v2978_v40 }
  0xcb   : > { %1379 = vmatpush1.bf16.msra.mxu0 %v2982_v41  ;;  %1422 = vmatpush1.bf16.msra.mxu1 %v2984_v42 }
  0xcc   : > { %1380 = vmatprep.subr.bf16.mxu0 %v2988_v43  ;;  %1423 = vmatprep.subr.bf16.mxu1 %v2990_v44 }
  0xcf   : > { %1381 = vmatpush1.bf16.msra.mxu0 %v2994_v45  ;;  %1424 = vmatpush1.bf16.msra.mxu1 %v2996_v46 }
  0xd0   : > { %1382 = vmatprep.subr.bf16.mxu0 %v3000_v47  ;;  %1425 = vmatprep.subr.bf16.mxu1 %v3002_v48 }
  0xd3   : > { %1383 = vmatpush1.bf16.msra.mxu0 %v3006_v49  ;;  %1426 = vmatpush1.bf16.msra.mxu1 %v3008_v50 }
  0xd4   : > { %1384 = vmatprep.subr.bf16.mxu0 %v3012_v51  ;;  %1427 = vmatprep.subr.bf16.mxu1 %v3014_v52 }
  0xd7   : > { %1385 = vmatpush1.bf16.msra.mxu0 %v3016_v53  ;;  %1428 = vmatpush1.bf16.msra.mxu1 %v3020_v54 }
  0xd8   : > { %1516 = vmatprep.subr.bf16.mxu0 %v2923_v22  ;;  %1559 = vmatprep.subr.bf16.mxu1 %v2925_v23 }
  0xda   : > { %1403 = vmatmul.mubr.bf16.vlgmr.msra.gmra.mrb[16].mxu0 %v1177_v57  ;;  %1446 = vmatmul.mubr.bf16.vlgmr.msra.gmra.mrb[16].mxu1 %v1177_v57 }
  0xdb   : > { %1517 = vmatpush1.bf16.msra.mxu0 %v2930_v25  ;;  %1560 = vmatpush1.bf16.msra.mxu1 %v2932_v26 }
  0xdc   : > { %1518 = vmatprep.subr.bf16.mxu0 %v2936_v27  ;;  %1561 = vmatprep.subr.bf16.mxu1 %v2938_v28 }
  0xdd   : > { %1548 = vmatprep.mubr.bf16.mxu0 %v3298_v4  ;;  %1591 = vmatprep.mubr.bf16.mxu1 %v3298_v4 }
  0xdf   : > { %1519 = vmatpush1.bf16.msra.mxu0 %v2944_v29  ;;  %1562 = vmatpush1.bf16.msra.mxu1 %v2946_v30 }
  0xe0   : > { %1520 = vmatprep.subr.bf16.mxu0 %v2950_v31  ;;  %1563 = vmatprep.subr.bf16.mxu1 %v2952_v32 }
  0xe3   : > { %1521 = vmatpush1.bf16.msra.mxu0 %v2958_v33  ;;  %1564 = vmatpush1.bf16.msra.mxu1 %v2960_v34 }
  0xe4   : > { %1522 = vmatprep.subr.bf16.mxu0 %v2964_v35  ;;  %1565 = vmatprep.subr.bf16.mxu1 %v2966_v36 }
  0xe7   : > { %1523 = vmatpush1.bf16.msra.mxu0 %v2970_v37  ;;  %1566 = vmatpush1.bf16.msra.mxu1 %v2972_v38 }
  0xe8   : > { %1524 = vmatprep.subr.bf16.mxu0 %v2976_v39  ;;  %1567 = vmatprep.subr.bf16.mxu1 %v2978_v40 }
  0xeb   : > { %1525 = vmatpush1.bf16.msra.mxu0 %v2982_v41  ;;  %1568 = vmatpush1.bf16.msra.mxu1 %v2984_v42 }
  0xec   : > { %1526 = vmatprep.subr.bf16.mxu0 %v2988_v43  ;;  %1569 = vmatprep.subr.bf16.mxu1 %v2990_v44 }
  0xef   : > { %1527 = vmatpush1.bf16.msra.mxu0 %v2994_v45  ;;  %1570 = vmatpush1.bf16.msra.mxu1 %v2996_v46 }
  0xf0   : > { %1528 = vmatprep.subr.bf16.mxu0 %v3000_v47  ;;  %1571 = vmatprep.subr.bf16.mxu1 %v3002_v48 }
  0xf3   : > { %1529 = vmatpush1.bf16.msra.mxu0 %v3006_v49  ;;  %1572 = vmatpush1.bf16.msra.mxu1 %v3008_v50 }
  0xf4   : > { %1530 = vmatprep.subr.bf16.mxu0 %v3012_v51  ;;  %1573 = vmatprep.subr.bf16.mxu1 %v3014_v52 }
  0xf7   : > { %1531 = vmatpush1.bf16.msra.mxu0 %v3016_v53  ;;  %1574 = vmatpush1.bf16.msra.mxu1 %v3020_v54 }
  0xf8   : > { %1662 = vmatprep.subr.bf16.mxu0 %v2923_v22  ;;  %1705 = vmatprep.subr.bf16.mxu1 %v2925_v23 }
 0x15d   : > { %v495_v5 = vpop.f32.mrb[0].mxu0  ;;  %v538_v7 = vpop.f32.mrb[0].mxu1 }
 0x15e   : > { %v496_v8 = vadd.f32 %v495_v5, %v3065_v1  ;;  %v497_v9 = vpop.f32.mrb[1].mxu0  ;;  %v539_v10 = vadd.f32 %v538_v7, %v3067_v2  ;;  %v540_v11 = vpop.f32.mrb[1].mxu1 }
 0x15f   : > { %v499_v12 = vpop.f32.mrb[2].mxu0  ;;  %v541_v13 = vadd.f32 %v540_v11, %v3069_v3  ;;  %v542_v14 = vpop.f32.mrb[2].mxu1  ;;  %v498_v19 = vadd.f32 %v497_v9, %v3071_v6 }
 0x160   : > { %v500_v15 = vadd.f32 %v499_v12, %v3065_v1  ;;  %v501_v16 = vpop.f32.mrb[3].mxu0  ;;  %v543_v17 = vadd.f32 %v542_v14, %v3067_v2  ;;  %v544_v18 = vpop.f32.mrb[3].mxu1 }
 0x161   : > { %v502_v20 = vadd.f32 %v501_v16, %v3071_v6  ;;  %v545_v21 = vadd.f32 %v544_v18, %v3069_v3 }
 0x162   : > { %v3081_v24 = vpack.c.bf16 %v500_v15, %v496_v8  ;;  %v3083_v55 = vpack.c.bf16 %v543_v17, %v539_v10 }
 0x163   : > { %v3085_v56 = vpack.c.bf16 %v502_v20, %v498_v19  ;;  %v3087_v57 = vpack.c.bf16 %v545_v21, %v541_v13 }
 0x16d   : > { %v696_v58 = vpop.f32.mrb[4].mxu0  ;;  %v739_v59 = vpop.f32.mrb[4].mxu1 }
 0x16e   : > { %v697_v60 = vadd.f32 %v696_v58, %v3065_v1  ;;  %v698_v61 = vpop.f32.mrb[5].mxu0  ;;  %v740_v62 = vadd.f32 %v739_v59, %v3067_v2  ;;  %v741_v63 = vpop.f32.mrb[5].mxu1 }
 0x16f   : > { %v699_v0 = vadd.f32 %v698_v61, %v3071_v6  ;;  %v700_v5 = vpop.f32.mrb[6].mxu0  ;;  %v742_v7 = vadd.f32 %v741_v63, %v3069_v3  ;;  %v743_v8 = vpop.f32.mrb[6].mxu1 }
 0x170   : > { %v701_v9 = vadd.f32 %v700_v5, %v3065_v1  ;;  %v702_v10 = vpop.f32.mrb[7].mxu0  ;;  %v744_v11 = vadd.f32 %v743_v8, %v3067_v2  ;;  %v745_v12 = vpop.f32.mrb[7].mxu1 }
 0x171   : > { %v703_v13 = vadd.f32 %v702_v10, %v3071_v6  ;;  %v746_v14 = vadd.f32 %v745_v12, %v3069_v3 }
 0x172   : > { %v3097_v15 = vpack.c.bf16 %v701_v9, %v697_v60  ;;  %v3099_v16 = vpack.c.bf16 %v744_v11, %v740_v62 }
 0x173   : > { %v3101_v17 = vpack.c.bf16 %v703_v13, %v699_v0  ;;  %v3103_v18 = vpack.c.bf16 %v746_v14, %v742_v7 }
 0x175   : > { %3314 = vst [vmem:[#allocation13_spill] sm:$0xff] %v3103_v18 }
 0x17d   : > { %v897_v19 = vpop.f32.mrb[8].mxu0  ;;  %v940_v20 = vpop.f32.mrb[8].mxu1 }
 0x17e   : > { %v898_v21 = vadd.f32 %v897_v19, %v3065_v1  ;;  %v899_v58 = vpop.f32.mrb[9].mxu0  ;;  %v941_v59 = vadd.f32 %v940_v20, %v3067_v2  ;;  %v942_v61 = vpop.f32.mrb[9].mxu1 }
 0x17f   : > { %v900_v63 = vadd.f32 %v899_v58, %v3071_v6  ;;  %v901_v5 = vpop.f32.mrb[10].mxu0  ;;  %v943_v60 = vadd.f32 %v942_v61, %v3069_v3  ;;  %v944_v8 = vpop.f32.mrb[10].mxu1 }
 0x180   : > { %v902_v62 = vadd.f32 %v901_v5, %v3065_v1  ;;  %v903_v0 = vpop.f32.mrb[11].mxu0  ;;  %v945_v7 = vadd.f32 %v944_v8, %v3067_v2  ;;  %v946_v9 = vpop.f32.mrb[11].mxu1 }
 0x181   : > { %v904_v10 = vadd.f32 %v903_v0, %v3071_v6  ;;  %v947_v11 = vadd.f32 %v946_v9, %v3069_v3 }
 0x182   : > { %v3113_v12 = vpack.c.bf16 %v902_v62, %v898_v21  ;;  %v3115_v13 = vpack.c.bf16 %v945_v7, %v941_v59 }
 0x183   : > { %v3117_v14 = vpack.c.bf16 %v904_v10, %v900_v63  ;;  %v3119_v19 = vpack.c.bf16 %v947_v11, %v943_v60 }
 0x185   : > { %3315 = vst [vmem:[#allocation14_spill] sm:$0xff] %v3119_v19 }
 0x18d   : > { %v1098_v20 = vpop.f32.mrb[12].mxu0  ;;  %v1141_v58 = vpop.f32.mrb[12].mxu1 }
 0x18e   : > { %v1099_v61 = vadd.f32 %v1098_v20, %v3065_v1  ;;  %v1100_v5 = vpop.f32.mrb[13].mxu0  ;;  %v1142_v8 = vadd.f32 %v1141_v58, %v3067_v2  ;;  %v1143_v4 = vpop.f32.mrb[13].mxu1 }
 0x18f   : > { %v1101_v0 = vadd.f32 %v1100_v5, %v3071_v6  ;;  %v1102_v18 = vpop.f32.mrb[14].mxu0  ;;  %v1144_v21 = vadd.f32 %v1143_v4, %v3069_v3  ;;  %v1145_v62 = vpop.f32.mrb[14].mxu1  ;;  %v1169_v4 = vunpack.c.l.bf16 %v3081_v24 }
 0x190   : > { %v1103_v59 = vadd.f32 %v1102_v18, %v3065_v1  ;;  %v1104_v63 = vpop.f32.mrb[15].mxu0  ;;  %v1146_v60 = vadd.f32 %v1145_v62, %v3067_v2  ;;  %v1147_v7 = vpop.f32.mrb[15].mxu1  ;;  %v1171_v1 = vunpack.c.l.bf16 %v3083_v55  ;;  %v1170_v2 = vunpack.c.l.bf16 %v3085_v56 }
 0x191   : > { %v1105_v9 = vadd.f32 %v1104_v63, %v3071_v6  ;;  %v1148_v10 = vadd.f32 %v1147_v7, %v3069_v3  ;;  %v1172_v6 = vunpack.c.l.bf16 %v3087_v57 }
 0x192   : > { %v3129_v11 = vpack.c.bf16 %v1103_v59, %v1099_v61  ;;  %v3131_v20 = vpack.c.bf16 %v1146_v60, %v1142_v8  ;;  %v1173_v8 = vunpack.c.h.bf16 %v3081_v24 }
 0x193   : > { %v3133_v58 = vpack.c.bf16 %v1105_v9, %v1101_v0  ;;  %v3135_v5 = vpack.c.bf16 %v1148_v10, %v1144_v21  ;;  %v1175_v0 = vunpack.c.h.bf16 %v3083_v55  ;;  %v1174_v9 = vunpack.c.h.bf16 %v3085_v56 }
 0x194   : > { %3316 = vst [vmem:[#allocation15_spill] sm:$0xff] %v3129_v11  ;;  %3317 = vst [vmem:[#allocation16_spill] sm:$0xff] %v3131_v20  ;;  %v1176_v10 = vunpack.c.h.bf16 %v3087_v57 }
 0x195   : > { %3318 = vst [vmem:[#allocation17_spill] sm:$0xff] %v3133_v58  ;;  %3319 = vst [vmem:[#allocation18_spill] sm:$0xff] %v3135_v5 }
 0x1ad   : > { %v1404_v18 = vpop.f32.mrb[16].mxu0  ;;  %v1447_v19 = vpop.f32.mrb[16].mxu1 }
 0x1ae   : > { %v1456_v62 = vadd.f32 %v1404_v18, %v1169_v4  ;;  %v1458_v3 = vadd.f32 %v1447_v19, %v1171_v1  ;;  %v1406_v61 = vpop.f32.mrb[17].mxu0  ;;  %v1449_v59 = vpop.f32.mrb[17].mxu1 }
 0x1af   : > { %v1457_v21 = vadd.f32 %v1406_v61, %v1170_v2  ;;  %v1459_v63 = vadd.f32 %v1449_v59, %v1172_v6  ;;  %v1408_v60 = vpop.f32.mrb[18].mxu0  ;;  %v1451_v7 = vpop.f32.mrb[18].mxu1 }
 0x1b0   : > { %v1464_v5 = vmul.f32 0.5, %v1456_v62  ;;  %v1460_v58 = vadd.f32 %v1408_v60, %v1173_v8  ;;  %v1462_v20 = vadd.f32 %v1451_v7, %v1175_v0  ;;  %v1410_v11 = vpop.f32.mrb[19].mxu0  ;;  %v1453_v4 = vpop.f32.mrb[19].mxu1  ;;  %v1160_v0 = vld [vmem:[#allocation4] sm:$0xff] }
 0x1b1   : > { %v1472_v19 = vmul.f32 0.5, %v1457_v21  ;;  %v1461_v1 = vadd.f32 %v1410_v11, %v1174_v9  ;;  %v1463_v18 = vadd.f32 %v1453_v4, %v1176_v10  ;;  %v1482_v57 = vmul.f32 0.5, %v1459_v63  ;;  %v1161_v10 = vld [vmem:[#allocation4 + $0x8] sm:$0xff] }
 0x1b2   : > { %2366 = vtanh.f32 %v1464_v5  ;;  %v1465_v24 = vmul.f32 0.5, %v1460_v58 }
 0x1b3   : > { %2368 = vtanh.f32 %v1472_v19  ;;  %v1473_v55 = vmul.f32 0.5, %v1461_v1  ;;  %v1483_v61 = vmul.f32 0.5, %v1463_v18 }
 0x1b4   : > { %2370 = vtanh.f32 %v1465_v24 }
 0x1b5   : > { %2372 = vtanh.f32 %v1458_v3 }
 0x1b6   : > { %2374 = vtanh.f32 %v1473_v55 }
 0x1b7   : > { %2376 = vtanh.f32 %v1462_v20 }
 0x1b8   : > { %2378 = vtanh.f32 %v1482_v57 }
 0x1b9   : > { %2380 = vtanh.f32 %v1483_v61 }
 0x1bc   : > { %v2367_v2 = vpop.eup %2366 }
 0x1bd   : > { %v2369_v56 = vpop.eup %2368  ;;  %v1468_v6 = vadd.f32 1.0, %v2367_v2 }
 0x1be   : > { %v1476_v62 = vadd.f32 1.0, %v2369_v56  ;;  %v2371_v59 = vpop.eup %2370 }
 0x1bf   : > { %v1470_v8 = vmul.f32 0.5, %v1468_v6  ;;  %v2373_v21 = vpop.eup %2372  ;;  %v1469_v60 = vadd.f32 1.0, %v2371_v59 }
 0x1c0   : > { %v1478_v11 = vmul.f32 0.5, %v1476_v62  ;;  %v2375_v5 = vpop.eup %2374 }
 0x1c1   : > { %v1492_v58 = vmul.f32 %v2373_v21, %v1470_v8  ;;  %v1471_v9 = vmul.f32 0.5, %v1469_v60  ;;  %v1477_v3 = vadd.f32 1.0, %v2375_v5  ;;  %v2377_v20 = vpop.eup %2376  ;;  %v3320_v21 = vmov 0  }
 0x1c2   : > { %v1490_v7 = vmul.f32 %v1478_v11, %v1160_v0  ;;  %v2379_v24 = vpop.eup %2378  ;;  %v1507_v11 = vunpack.c.l.bf16 %v3097_v15  ;;  %v1509_v60 = vunpack.c.l.bf16 %v3099_v16 }
 0x1c3   : > { %v1479_v63 = vmul.f32 0.5, %v1477_v3  ;;  %v1493_v19 = vmul.f32 %v2377_v20, %v1471_v9  ;;  %v2381_v55 = vpop.eup %2380  ;;  %v1486_v2 = vadd.f32 1.0, %v2379_v24  ;;  %v3321_v9 = vld [vmem:[#allocation13_spill] sm:$0xff] }
 0x1c4   : > { %v3145_v4 = vadd.f32 %v1492_v58, %v1490_v7  ;;  %v1487_v56 = vadd.f32 1.0, %v2381_v55  ;;  %v1508_v7 = vunpack.c.l.bf16 %v3101_v17  ;;  %v1510_v3 = vunpack.c.l.bf16 %v3321_v9 }
 0x1c5   : > { %v1491_v1 = vmul.f32 %v1479_v63, %v1161_v10  ;;  %v1488_v57 = vmul.f32 0.5, %v1486_v2 }
 0x1c6   : > { %2382 = vtanh.f32 %v3145_v4  ;;  %v1489_v62 = vmul.f32 0.5, %v1487_v56  ;;  %v1512_v56 = vunpack.c.h.bf16 %v3101_v17 }
 0x1c7   : > { %v3148_v18 = vadd.f32 %v1493_v19, %v1491_v1  ;;  %v1511_v1 = vunpack.c.h.bf16 %v3097_v15 }
 0x1c9   : > { %2384 = vtanh.f32 %v3148_v18 }
 0x1d0   : > { %v2383_v6 = vpop.eup %2382 }
 0x1d1   : > { %v1498_v59 = vmul.f32 %v2383_v6, %v1488_v57  ;;  %v1514_v6 = vunpack.c.h.bf16 %v3321_v9 }
 0x1d3   : > { %v2385_v61 = vpop.eup %2384 }
 0x1d4   : > { %v1499_v8 = vmul.f32 %v2385_v61, %v1489_v62 }
 0x1d6   : > { %v1515_v0 = vpack.c.bf16 %v1499_v8, %v1498_v59 }
 0x1d8   : > { %1549 = vmatmul.mubr.bf16.vlgmr.msra.gmra.mrb[20].mxu0 %v1515_v0  ;;  %1592 = vmatmul.mubr.bf16.vlgmr.msra.gmra.mrb[20].mxu1 %v1515_v0 }
 0x1d9   : > { %1663 = vmatpush1.bf16.msra.mxu0 %v2930_v25  ;;  %1706 = vmatpush1.bf16.msra.mxu1 %v2932_v26 }
 0x1da   : > { %1664 = vmatprep.subr.bf16.mxu0 %v2936_v27  ;;  %1707 = vmatprep.subr.bf16.mxu1 %v2938_v28 }
 0x1db   : > { %1694 = vmatprep.mubr.bf16.mxu0 %v3320_v21  ;;  %1737 = vmatprep.mubr.bf16.mxu1 %v3320_v21 }
 0x1dd   : > { %1665 = vmatpush1.bf16.msra.mxu0 %v2944_v29  ;;  %1708 = vmatpush1.bf16.msra.mxu1 %v2946_v30 }
 0x1de   : > { %1666 = vmatprep.subr.bf16.mxu0 %v2950_v31  ;;  %1709 = vmatprep.subr.bf16.mxu1 %v2952_v32 }
 0x1e1   : > { %1667 = vmatpush1.bf16.msra.mxu0 %v2958_v33  ;;  %1710 = vmatpush1.bf16.msra.mxu1 %v2960_v34 }
 0x1e2   : > { %1668 = vmatprep.subr.bf16.mxu0 %v2964_v35  ;;  %1711 = vmatprep.subr.bf16.mxu1 %v2966_v36 }
 0x1e5   : > { %1669 = vmatpush1.bf16.msra.mxu0 %v2970_v37  ;;  %1712 = vmatpush1.bf16.msra.mxu1 %v2972_v38 }
 0x1e6   : > { %1670 = vmatprep.subr.bf16.mxu0 %v2976_v39  ;;  %1713 = vmatprep.subr.bf16.mxu1 %v2978_v40 }
 0x1e9   : > { %1671 = vmatpush1.bf16.msra.mxu0 %v2982_v41  ;;  %1714 = vmatpush1.bf16.msra.mxu1 %v2984_v42 }
 0x1ea   : > { %1672 = vmatprep.subr.bf16.mxu0 %v2988_v43  ;;  %1715 = vmatprep.subr.bf16.mxu1 %v2990_v44 }
 0x1ed   : > { %1673 = vmatpush1.bf16.msra.mxu0 %v2994_v45  ;;  %1716 = vmatpush1.bf16.msra.mxu1 %v2996_v46 }
 0x1ee   : > { %1674 = vmatprep.subr.bf16.mxu0 %v3000_v47  ;;  %1717 = vmatprep.subr.bf16.mxu1 %v3002_v48 }
 0x1f1   : > { %1675 = vmatpush1.bf16.msra.mxu0 %v3006_v49  ;;  %1718 = vmatpush1.bf16.msra.mxu1 %v3008_v50 }
 0x1f2   : > { %1676 = vmatprep.subr.bf16.mxu0 %v3012_v51  ;;  %1719 = vmatprep.subr.bf16.mxu1 %v3014_v52 }
 0x1f5   : > { %1677 = vmatpush1.bf16.msra.mxu0 %v3016_v53  ;;  %1720 = vmatpush1.bf16.msra.mxu1 %v3020_v54 }
 0x1f6   : > { %1808 = vmatprep.subr.bf16.mxu0 %v2923_v22  ;;  %1851 = vmatprep.subr.bf16.mxu1 %v2925_v23  ;;  %v1513_v22 = vunpack.c.h.bf16 %v3099_v16 }
 0x2ab   : > { %v1550_v5 = vpop.f32.mrb[20].mxu0  ;;  %v1593_v58 = vpop.f32.mrb[20].mxu1 }
 0x2ac   : > { %v1602_v20 = vadd.f32 %v1550_v5, %v1507_v11  ;;  %v1604_v10 = vadd.f32 %v1593_v58, %v1509_v60  ;;  %v1552_v63 = vpop.f32.mrb[21].mxu0  ;;  %v1595_v19 = vpop.f32.mrb[21].mxu1 }
 0x2ad   : > { %v1603_v24 = vadd.f32 %v1552_v63, %v1508_v7  ;;  %v1605_v23 = vadd.f32 %v1595_v19, %v1510_v3  ;;  %v1554_v55 = vpop.f32.mrb[22].mxu0  ;;  %v1597_v2 = vpop.f32.mrb[22].mxu1 }
 0x2ae   : > { %v1610_v57 = vmul.f32 0.5, %v1602_v20  ;;  %v1606_v62 = vadd.f32 %v1554_v55, %v1511_v1  ;;  %v1608_v61 = vadd.f32 %v1597_v2, %v1513_v22  ;;  %v1556_v59 = vpop.f32.mrb[23].mxu0  ;;  %v1599_v8 = vpop.f32.mrb[23].mxu1 }
 0x2af   : > { %v1618_v0 = vmul.f32 0.5, %v1603_v24  ;;  %v1607_v11 = vadd.f32 %v1556_v59, %v1512_v56  ;;  %v1609_v60 = vadd.f32 %v1599_v8, %v1514_v6  ;;  %v1628_v7 = vmul.f32 0.5, %v1605_v23 }
 0x2b0   : > { %2386 = vtanh.f32 %v1610_v57  ;;  %v1611_v15 = vmul.f32 0.5, %v1606_v62 }
 0x2b1   : > { %2388 = vtanh.f32 %v1618_v0  ;;  %v1619_v16 = vmul.f32 0.5, %v1607_v11  ;;  %v1629_v3 = vmul.f32 0.5, %v1609_v60 }
 0x2b2   : > { %2390 = vtanh.f32 %v1611_v15 }
 0x2b3   : > { %2392 = vtanh.f32 %v1604_v10 }
 0x2b4   : > { %2394 = vtanh.f32 %v1619_v16 }
 0x2b5   : > { %2396 = vtanh.f32 %v1608_v61 }
 0x2b6   : > { %2398 = vtanh.f32 %v1628_v7 }
 0x2b7   : > { %2400 = vtanh.f32 %v1629_v3 }
 0x2ba   : > { %v2387_v5 = vpop.eup %2386 }
 0x2bb   : > { %v2389_v17 = vpop.eup %2388  ;;  %v1614_v58 = vadd.f32 1.0, %v2387_v5 }
 0x2bc   : > { %v1622_v9 = vadd.f32 1.0, %v2389_v17  ;;  %v2391_v20 = vpop.eup %2390 }
 0x2bd   : > { %v1616_v63 = vmul.f32 0.5, %v1614_v58  ;;  %v2393_v19 = vpop.eup %2392  ;;  %v1615_v22 = vadd.f32 1.0, %v2391_v20 }
 0x2be   : > { %v1624_v1 = vmul.f32 0.5, %v1622_v9  ;;  %v2395_v24 = vpop.eup %2394 }
 0x2bf   : > { %v1638_v55 = vmul.f32 %v2393_v19, %v1616_v63  ;;  %v1617_v56 = vmul.f32 0.5, %v1615_v22  ;;  %v1623_v10 = vadd.f32 1.0, %v2395_v24  ;;  %v2397_v6 = vpop.eup %2396 }
 0x2c0   : > { %v1636_v2 = vmul.f32 %v1624_v1, %v3145_v4  ;;  %v2399_v8 = vpop.eup %2398 }
 0x2c1   : > { %v1625_v62 = vmul.f32 0.5, %v1623_v10  ;;  %v1639_v23 = vmul.f32 %v2397_v6, %v1617_v56  ;;  %v2401_v0 = vpop.eup %2400  ;;  %v1632_v11 = vadd.f32 1.0, %v2399_v8 }
 0x2c2   : > { %v3194_v57 = vadd.f32 %v1638_v55, %v1636_v2  ;;  %v1633_v4 = vadd.f32 1.0, %v2401_v0 }
 0x2c3   : > { %v1637_v61 = vmul.f32 %v1625_v62, %v3148_v18  ;;  %v1634_v15 = vmul.f32 0.5, %v1632_v11 }
 0x2c4   : > { %2402 = vtanh.f32 %v3194_v57  ;;  %v1635_v16 = vmul.f32 0.5, %v1633_v4 }
 0x2c5   : > { %v3198_v59 = vadd.f32 %v1639_v23, %v1637_v61 }
 0x2c7   : > { %2404 = vtanh.f32 %v3198_v59 }
 0x2ce   : > { %v2403_v60 = vpop.eup %2402 }
 0x2cf   : > { %v1644_v17 = vmul.f32 %v2403_v60, %v1634_v15 }
 0x2d1   : > { %v2405_v5 = vpop.eup %2404 }
 0x2d2   : > { %v1645_v58 = vmul.f32 %v2405_v5, %v1635_v16 }
 0x2d4   : > { %v1661_v7 = vpack.c.bf16 %v1645_v58, %v1644_v17 }
 0x2d6   : > { %1695 = vmatmul.mubr.bf16.vlgmr.msra.gmra.mrb[24].mxu0 %v1661_v7  ;;  %1738 = vmatmul.mubr.bf16.vlgmr.msra.gmra.mrb[24].mxu1 %v1661_v7 }
 0x2d7   : > { %1809 = vmatpush1.bf16.msra.mxu0 %v2930_v25  ;;  %1852 = vmatpush1.bf16.msra.mxu1 %v2932_v26  ;;  %v1653_v25 = vunpack.c.l.bf16 %v3113_v12  ;;  %v1655_v26 = vunpack.c.l.bf16 %v3115_v13 }
 0x2d8   : > { %1810 = vmatprep.subr.bf16.mxu0 %v2936_v27  ;;  %1853 = vmatprep.subr.bf16.mxu1 %v2938_v28 }
 0x2d9   : > { %1840 = vmatprep.mubr.bf16.mxu0 %v3320_v21  ;;  %1883 = vmatprep.mubr.bf16.mxu1 %v3320_v21 }
 0x2db   : > { %1811 = vmatpush1.bf16.msra.mxu0 %v2944_v29  ;;  %1854 = vmatpush1.bf16.msra.mxu1 %v2946_v30  ;;  %v1654_v29 = vunpack.c.l.bf16 %v3117_v14  ;;  %v3322_v30 = vld [vmem:[#allocation14_spill] sm:$0xff] }
 0x2dc   : > { %1812 = vmatprep.subr.bf16.mxu0 %v2950_v31  ;;  %1855 = vmatprep.subr.bf16.mxu1 %v2952_v32  ;;  %v1656_v31 = vunpack.c.l.bf16 %v3322_v30 }
 0x2df   : > { %1813 = vmatpush1.bf16.msra.mxu0 %v2958_v33  ;;  %1856 = vmatpush1.bf16.msra.mxu1 %v2960_v34 }
 0x2e0   : > { %1814 = vmatprep.subr.bf16.mxu0 %v2964_v35  ;;  %1857 = vmatprep.subr.bf16.mxu1 %v2966_v36  ;;  %v1657_v36 = vunpack.c.h.bf16 %v3113_v12 }
 0x2e3   : > { %1815 = vmatpush1.bf16.msra.mxu0 %v2970_v37  ;;  %1858 = vmatpush1.bf16.msra.mxu1 %v2972_v38  ;;  %v1659_v37 = vunpack.c.h.bf16 %v3115_v13 }
 0x2e4   : > { %1816 = vmatprep.subr.bf16.mxu0 %v2976_v39  ;;  %1859 = vmatprep.subr.bf16.mxu1 %v2978_v40 }
 0x2e7   : > { %1817 = vmatpush1.bf16.msra.mxu0 %v2982_v41  ;;  %1860 = vmatpush1.bf16.msra.mxu1 %v2984_v42  ;;  %v1658_v42 = vunpack.c.h.bf16 %v3117_v14 }
 0x2e8   : > { %1818 = vmatprep.subr.bf16.mxu0 %v2988_v43  ;;  %1861 = vmatprep.subr.bf16.mxu1 %v2990_v44  ;;  %v1660_v43 = vunpack.c.h.bf16 %v3322_v30 }
 0x2eb   : > { %1819 = vmatpush1.bf16.msra.mxu0 %v2994_v45  ;;  %1862 = vmatpush1.bf16.msra.mxu1 %v2996_v46 }
 0x2ec   : > { %1820 = vmatprep.subr.bf16.mxu0 %v3000_v47  ;;  %1863 = vmatprep.subr.bf16.mxu1 %v3002_v48 }
 0x2ef   : > { %1821 = vmatpush1.bf16.msra.mxu0 %v3006_v49  ;;  %1864 = vmatpush1.bf16.msra.mxu1 %v3008_v50 }
 0x2f0   : > { %1822 = vmatprep.subr.bf16.mxu0 %v3012_v51  ;;  %1865 = vmatprep.subr.bf16.mxu1 %v3014_v52 }
 0x2f3   : > { %1823 = vmatpush1.bf16.msra.mxu0 %v3016_v53  ;;  %1866 = vmatpush1.bf16.msra.mxu1 %v3020_v54 }
 0x3a9   : > { %v1696_v27 = vpop.f32.mrb[24].mxu0  ;;  %v1739_v28 = vpop.f32.mrb[24].mxu1 }
 0x3aa   : > { %v1748_v32 = vadd.f32 %v1696_v27, %v1653_v25  ;;  %v1750_v33 = vadd.f32 %v1739_v28, %v1655_v26  ;;  %v1698_v34 = vpop.f32.mrb[25].mxu0  ;;  %v1741_v35 = vpop.f32.mrb[25].mxu1  ;;  %v3324_v25 = vld [vmem:[#allocation16_spill] sm:$0xff] }
 0x3ab   : > { %v1749_v38 = vadd.f32 %v1698_v34, %v1654_v29  ;;  %v1751_v39 = vadd.f32 %v1741_v35, %v1656_v31  ;;  %v1700_v40 = vpop.f32.mrb[26].mxu0  ;;  %v1743_v41 = vpop.f32.mrb[26].mxu1  ;;  %v1801_v26 = vunpack.c.l.bf16 %v3324_v25  ;;  %v3325_v29 = vld [vmem:[#allocation17_spill] sm:$0xff]  ;;  %v3326_v31 = vld [vmem:[#allocation18_spill] sm:$0xff] }
 0x3ac   : > { %v1756_v44 = vmul.f32 0.5, %v1748_v32  ;;  %v1752_v45 = vadd.f32 %v1700_v40, %v1657_v36  ;;  %v1754_v46 = vadd.f32 %v1743_v41, %v1659_v37  ;;  %v1702_v47 = vpop.f32.mrb[27].mxu0  ;;  %v1745_v48 = vpop.f32.mrb[27].mxu1  ;;  %v1800_v30 = vunpack.c.l.bf16 %v3325_v29 }
 0x3ad   : > { %v1764_v49 = vmul.f32 0.5, %v1749_v38  ;;  %v1753_v50 = vadd.f32 %v1702_v47, %v1658_v42  ;;  %v1755_v51 = vadd.f32 %v1745_v48, %v1660_v43  ;;  %v1774_v14 = vmul.f32 0.5, %v1751_v39 }
 0x3ae   : > { %2406 = vtanh.f32 %v1756_v44  ;;  %v1757_v52 = vmul.f32 0.5, %v1752_v45  ;;  %v1802_v32 = vunpack.c.l.bf16 %v3326_v31  ;;  %v1805_v38 = vunpack.c.h.bf16 %v3324_v25 }
 0x3af   : > { %2408 = vtanh.f32 %v1764_v49  ;;  %v1765_v53 = vmul.f32 0.5, %v1753_v50  ;;  %v1775_v21 = vmul.f32 0.5, %v1755_v51  ;;  %v1804_v43 = vunpack.c.h.bf16 %v3325_v29 }
 0x3b0   : > { %2410 = vtanh.f32 %v1757_v52  ;;  %v1806_v44 = vunpack.c.h.bf16 %v3326_v31 }
 0x3b1   : > { %2412 = vtanh.f32 %v1750_v33 }
 0x3b2   : > { %2414 = vtanh.f32 %v1765_v53 }
 0x3b3   : > { %2416 = vtanh.f32 %v1754_v46 }
 0x3b4   : > { %2418 = vtanh.f32 %v1774_v14 }
 0x3b5   : > { %2420 = vtanh.f32 %v1775_v21 }
 0x3b8   : > { %v2407_v54 = vpop.eup %2406 }
 0x3b9   : > { %v2409_v12 = vpop.eup %2408  ;;  %v1760_v13 = vadd.f32 1.0, %v2407_v54 }
 0x3ba   : > { %v1768_v18 = vadd.f32 1.0, %v2409_v12  ;;  %v2411_v9 = vpop.eup %2410 }
 0x3bb   : > { %v1762_v3 = vmul.f32 0.5, %v1760_v13  ;;  %v2413_v20 = vpop.eup %2412  ;;  %v1761_v19 = vadd.f32 1.0, %v2411_v9 }
 0x3bc   : > { %v1770_v63 = vmul.f32 0.5, %v1768_v18  ;;  %v2415_v1 = vpop.eup %2414 }
 0x3bd   : > { %v1784_v22 = vmul.f32 %v2413_v20, %v1762_v3  ;;  %v1763_v55 = vmul.f32 0.5, %v1761_v19  ;;  %v1769_v2 = vadd.f32 1.0, %v2415_v1  ;;  %v2417_v56 = vpop.eup %2416 }
 0x3be   : > { %v1782_v24 = vmul.f32 %v1770_v63, %v3194_v57  ;;  %v2419_v8 = vpop.eup %2418 }
 0x3bf   : > { %v1771_v6 = vmul.f32 0.5, %v1769_v2  ;;  %v1785_v62 = vmul.f32 %v2417_v56, %v1763_v55  ;;  %v2421_v0 = vpop.eup %2420  ;;  %v1778_v11 = vadd.f32 1.0, %v2419_v8 }
 0x3c0   : > { %v3242_v10 = vadd.f32 %v1784_v22, %v1782_v24  ;;  %v1779_v57 = vadd.f32 1.0, %v2421_v0 }
 0x3c1   : > { %v1783_v23 = vmul.f32 %v1771_v6, %v3198_v59  ;;  %v1780_v60 = vmul.f32 0.5, %v1778_v11  ;;  %v3323_v59 = vld [vmem:[#allocation15_spill] sm:$0xff] }
 0x3c2   : > { %2422 = vtanh.f32 %v3242_v10  ;;  %v1781_v15 = vmul.f32 0.5, %v1779_v57  ;;  %v1799_v7 = vunpack.c.l.bf16 %v3323_v59  ;;  %v1803_v37 = vunpack.c.h.bf16 %v3323_v59 }
 0x3c3   : > { %v3246_v61 = vadd.f32 %v1785_v62, %v1783_v23 }
 0x3c5   : > { %2424 = vtanh.f32 %v3246_v61 }
 0x3cc   : > { %v2423_v4 = vpop.eup %2422 }
 0x3cd   : > { %v1790_v5 = vmul.f32 %v2423_v4, %v1780_v60 }
 0x3cf   : > { %v2425_v16 = vpop.eup %2424 }
 0x3d0   : > { %v1791_v17 = vmul.f32 %v2425_v16, %v1781_v15 }
 0x3d2   : > { %v1807_v58 = vpack.c.bf16 %v1791_v17, %v1790_v5 }
 0x3d4   : > { %1841 = vmatmul.mubr.bf16.vlgmr.msra.gmra.mrb[28].mxu0 %v1807_v58  ;;  %1884 = vmatmul.mubr.bf16.vlgmr.msra.gmra.mrb[28].mxu1 %v1807_v58 }
 0x4a7   : > { %v1842_v27 = vpop.f32.mrb[28].mxu0  ;;  %v1885_v28 = vpop.f32.mrb[28].mxu1 }
 0x4a8   : > { %v1894_v33 = vadd.f32 %v1842_v27, %v1799_v7  ;;  %v1896_v34 = vadd.f32 %v1885_v28, %v1801_v26  ;;  %v1844_v35 = vpop.f32.mrb[29].mxu0  ;;  %v1887_v36 = vpop.f32.mrb[29].mxu1  ;;  %v2201_v26 = vld [vmem:[#allocation5] ss:$0 sm:$0xff] (!%p2199_p9) }
 0x4a9   : > { %v1895_v39 = vadd.f32 %v1844_v35, %v1800_v30  ;;  %v1897_v40 = vadd.f32 %v1887_v36, %v1802_v32  ;;  %v1846_v41 = vpop.f32.mrb[30].mxu0  ;;  %v1889_v42 = vpop.f32.mrb[30].mxu1 }
 0x4aa   : > { %v1902_v45 = vmul.f32 0.5, %v1894_v33  ;;  %v1898_v46 = vadd.f32 %v1846_v41, %v1803_v37  ;;  %v1900_v47 = vadd.f32 %v1889_v42, %v1805_v38  ;;  %v1848_v48 = vpop.f32.mrb[31].mxu0  ;;  %v1891_v49 = vpop.f32.mrb[31].mxu1 }
 0x4ab   : > { %v1910_v50 = vmul.f32 0.5, %v1895_v39  ;;  %v1899_v51 = vadd.f32 %v1848_v48, %v1804_v43  ;;  %v1901_v52 = vadd.f32 %v1891_v49, %v1806_v44  ;;  %v1920_v12 = vmul.f32 0.5, %v1897_v40 }
 0x4ac   : > { %2426 = vtanh.f32 %v1902_v45  ;;  %v1903_v53 = vmul.f32 0.5, %v1898_v46 }
 0x4ad   : > { %2428 = vtanh.f32 %v1910_v50  ;;  %v1911_v54 = vmul.f32 0.5, %v1899_v51  ;;  %v1921_v9 = vmul.f32 0.5, %v1901_v52 }
 0x4ae   : > { %2430 = vtanh.f32 %v1903_v53 }
 0x4af   : > { %2432 = vtanh.f32 %v1896_v34 }
 0x4b0   : > { %2434 = vtanh.f32 %v1911_v54 }
 0x4b1   : > { %2436 = vtanh.f32 %v1900_v47 }
 0x4b2   : > { %2438 = vtanh.f32 %v1920_v12 }
 0x4b3   : > { %2440 = vtanh.f32 %v1921_v9 }
 0x4b6   : > { %v2427_v13 = vpop.eup %2426 }
 0x4b7   : > { %v2429_v14 = vpop.eup %2428  ;;  %v1906_v18 = vadd.f32 1.0, %v2427_v13 }
 0x4b8   : > { %v1914_v21 = vadd.f32 1.0, %v2429_v14  ;;  %v2431_v3 = vpop.eup %2430 }
 0x4b9   : > { %v1908_v20 = vmul.f32 0.5, %v1906_v18  ;;  %v2433_v63 = vpop.eup %2432  ;;  %v1907_v1 = vadd.f32 1.0, %v2431_v3 }
 0x4ba   : > { %v1916_v19 = vmul.f32 0.5, %v1914_v21  ;;  %v2435_v22 = vpop.eup %2434 }
 0x4bb   : > { %v1930_v24 = vmul.f32 %v2433_v63, %v1908_v20  ;;  %v1909_v2 = vmul.f32 0.5, %v1907_v1  ;;  %v1915_v56 = vadd.f32 1.0, %v2435_v22  ;;  %v2437_v6 = vpop.eup %2436 }
 0x4bc   : > { %v1928_v55 = vmul.f32 %v1916_v19, %v3242_v10  ;;  %v2439_v11 = vpop.eup %2438 }
 0x4bd   : > { %v1917_v23 = vmul.f32 0.5, %v1915_v56  ;;  %v1931_v8 = vmul.f32 %v2437_v6, %v1909_v2  ;;  %v1924_v4 = vadd.f32 1.0, %v2439_v11  ;;  %v2441_v60 = vpop.eup %2440 }
 0x4be   : > { %v1932_v62 = vadd.f32 %v1930_v24, %v1928_v55  ;;  %v1925_v16 = vadd.f32 1.0, %v2441_v60 }
 0x4bf   : > { %v1929_v0 = vmul.f32 %v1917_v23, %v3246_v61  ;;  %v1926_v15 = vmul.f32 0.5, %v1924_v4  ;;  %v2200_v61 = vld [vmem:[%s3291_s4] ss:$0 sm:$0xff] (!%p2199_p9) }
 0x4c0   : > { %2442 = vtanh.f32 %v1932_v62  ;;  %1940 = vst [vmem:[#allocation4] sm:$0xff] %v1932_v62  ;;  %v1927_v17 = vmul.f32 0.5, %v1925_v16 }
 0x4c1   : > { %v1933_v57 = vadd.f32 %v1931_v8, %v1929_v0 }
 0x4c3   : > { %2444 = vtanh.f32 %v1933_v57  ;;  %1941 = vst [vmem:[#allocation4 + $0x8] sm:$0xff] %v1933_v57 }
 0x4ca   : > { %v2443_v10 = vpop.eup %2442  ;;  %1945 = sbr.rel (%p2199_p9) target bundleno = 1391 (0x56f), region = 64 }
 0x4cb   : > { %v1936_v5 = vmul.f32 %v2443_v10, %v1926_v15 }
 0x4cd   : > { %1938 = vst [vmem:[#allocation3] sm:$0xff] %v1936_v5  ;;  %v2445_v58 = vpop.eup %2444  ;;  %v1953_v7 = vmul.f32 (!%p2199_p9), %v2200_v61, %v1936_v5 }
 0x4ce   : > { %v1937_v59 = vmul.f32 %v2445_v58, %v1927_v17 }
 0x4cf   : > { %1955 = vadd.xlane.f32.xlu0 (!%p2199_p9), %v1953_v7 }
 0x4d0   : > { %1939 = vst [vmem:[#allocation3 + $0x8] sm:$0xff] %v1937_v59  ;;  %v1954_v25 = vmul.f32 (!%p2199_p9), %v2200_v61, %v1937_v59 }
 0x4d3   : > { %1957 = vadd.xlane.f32.xlu0 %v1954_v25 }
 0x55c   : > { %v1956_v27 = vpop.xlane.xlu0 %1955 }
 0x55d   : > { %v1966_v28 = vadd.f32 %v2201_v26, %v1956_v27 }
 0x55f   : > { %2446 = vtanh.f32 %v1966_v28 }
 0x560   : > { %v1958_v29 = vpop.xlane.xlu0 %1957 }
 0x561   : > { %v1967_v30 = vadd.f32 %v2201_v26, %v1958_v29 }
 0x563   : > { %2448 = vtanh.f32 %v1967_v30 }
 0x569   : > { %v2447_v31 = vpop.eup %2446 }
 0x56a   : > { %1971 = vst.msk [vmem:[%s3293_s6] sm:$0xff] %vm1970_vm1, %v2447_v31 }
 0x56d   : > { %v2449_v32 = vpop.eup %2448 }
 0x56e   : > { %1972 = vst.msk [vmem:[%s3293_s6 + $0x8] sm:$0xff] %vm1970_vm1, %v2449_v32 }
 0x56f PF: > { %s22_s28 = sadd.s32 1, %s2590_s28   ;;  %s3327_s23 = smov %s2574_s24 }
 0x570   : > { %p19_p8 = scmp.ge.s32.totalorder %s22_s28, 4   ;;  %s3328_s24 = smov %s2578_s25 }
 0x571   : > { %s3329_s25 = smov %s2755_s13  ;;  %s3330_s26 = smov %s2586_s27 }
 0x572   : > { %s3331_s27 = smov %s3333_s20  ;;  %21 = sbr.rel (!%p19_p8) target bundleno = 8 (0x8), region = 107 }
 0x579   :  { %1995 = vsyncpa [#allocation7], 1 }
 0x57a   :  { %1997 = vsyncpa [#allocation7 + $0x1], 1 }
 0x57b   :  { %1998 = vsyncpa [#allocation9], 1 }

</bundles_post_ra>
